<compile_context>
chip_gen: v5e
topology: v5e:2x2
jax: 0.10.0
libtpu: 0.0.40
codegen_flags: <defaults>
</compile_context>

<pallas_src>
import jax
import jax.numpy as jnp
from jax import lax
from jax.experimental import pallas as pl
from jax.experimental.pallas import tpu as pltpu

# ---- config consistent with GLMAttention semantics (tp_size = 1) ----
HIDDEN = 32
NUM_HEADS = 4
NUM_KV_HEADS = 2                       # multi_query_attention, group_num = 2
GROUP = NUM_HEADS // NUM_KV_HEADS      # 2 query heads per kv head
HEAD_DIM = HIDDEN // NUM_HEADS         # 8
ROT_DIM = HEAD_DIM // 2                # 4 (rotary_dim = head_dim // 2)
Q_SIZE = NUM_HEADS * HEAD_DIM          # 32
KV_SIZE = NUM_KV_HEADS * HEAD_DIM      # 16
QKV_SIZE = Q_SIZE + 2 * KV_SIZE        # 64 (natural layout)
SEQ = 8                                # tokens per sequence (toy prefill)
SCALING = HEAD_DIM ** -0.5
ROPE_BASE = 10000.0                    # 10000 * rope_ratio(=1.0)

# fused / padded projection layout (one 128-lane slab):
#   lanes [h*16 + (h//GROUP)*8 : +8]  -> q of head h (zero-padded to 16 wide)
#   lanes [64:80] -> k, lanes [80:96] -> v, lanes [96:128] -> zero pad
SLAB = 128
K_OFF = NUM_HEADS * KV_SIZE            # 64
V_OFF = K_OFF + KV_SIZE                # 80

SEQS_PER_BLOCK = 8                     # sequences packed per grid step
BLOCK_TOKENS = SEQS_PER_BLOCK * SEQ    # 64 tokens / step
STACKED = NUM_HEADS * BLOCK_TOKENS     # 256 rows for the fused QK^T / PV


def glm_attention_kernel(x_ref, cos_ref, sin_ref, mask_ref, w_ab_ref,
                         b_ab_ref, w_dense_ref, out_ref):
    f32 = jnp.float32
    x = x_ref[...]                                           # (BT, HIDDEN)

    # Fused QKV projection: one matmul produces both the "identity" half and
    # the "signed pair-swap" half (RoPE rotation is linear, so the swap is
    # pre-folded into the second 128 weight columns).  Attention scaling is
    # pre-folded into the Q columns/bias.
    ab = jnp.dot(x, w_ab_ref[...], preferred_element_type=f32) + b_ab_ref[...]
    # RoPE is now purely elementwise; both slices are 128-lane aligned.
    qkv = ab[:, :SLAB] * cos_ref[...] + ab[:, SLAB:] * sin_ref[...]

    k = qkv[:, K_OFF:K_OFF + KV_SIZE]                        # (BT, 16)
    v = qkv[:, V_OFF:V_OFF + KV_SIZE]                        # (BT, 16)

    # Stack ALL query heads along sublanes; each head is already zero-padded
    # to the full 16-wide KV contraction slot by the weight layout, so this
    # is just 16-wide aligned lane slices + one sublane concat.
    q_st = jnp.concatenate(
        [qkv[:, h * KV_SIZE:(h + 1) * KV_SIZE] for h in range(NUM_HEADS)],
        axis=0)                                              # (NH*BT, 16)

    # Single fused QK^T over all heads (scaling pre-folded), additive
    # block-diagonal causal mask (0 / -1e30; every row keeps its diagonal
    # unmasked, so the exp/renorm below is always well defined).
    s = lax.dot_general(q_st, k, (((1,), (1,)), ((), ())),
                        preferred_element_type=f32) + mask_ref[...]
    m = jnp.max(s, axis=-1, keepdims=True)
    e = jnp.exp(s - m)
    denom = jnp.sum(e, axis=-1, keepdims=True)               # (NH*BT, 1)

    # Single fused PV; exact normalization applied after PV (16 lanes instead
    # of BT lanes — cheaper and avoids approx-reciprocal accuracy concerns).
    ctx_full = jnp.dot(e, v, preferred_element_type=f32) / denom  # (NH*BT, 16)

    # Gather each head's 8 relevant context columns back into (BT, Q_SIZE).
    ctx = jnp.concatenate(
        [ctx_full[h * BLOCK_TOKENS:(h + 1) * BLOCK_TOKENS,
                  (h // GROUP) * HEAD_DIM:(h // GROUP + 1) * HEAD_DIM]
         for h in range(NUM_HEADS)], axis=1)                 # (BT, 32)

    # Single fused dense (RowParallelLinear, bias=False).
    out = jnp.dot(ctx, w_dense_ref[...], preferred_element_type=f32)

    # Lane-dense store: rearrange the packed sequences along lanes -> (8, 256).
    out_ref[...] = jnp.concatenate(
        [out[g * SEQ:(g + 1) * SEQ, :] for g in range(SEQS_PER_BLOCK)],
        axis=1).astype(out_ref.dtype)


def glm_attention(hidden_states, position_ids, w_qkv, b_qkv, w_dense):
    """hidden_states: (B, T, HIDDEN); position_ids: (B, T) -> (B, T, HIDDEN)."""
    f32 = jnp.float32
    B, T, H = hidden_states.shape
    assert H == HIDDEN and T == SEQ
    G = SEQS_PER_BLOCK
    assert B % G == 0, "toy batching requires B % SEQS_PER_BLOCK == 0"
    nblk = B // G

    x_flat = hidden_states.reshape(B * T, HIDDEN).astype(f32)
    g_of = [h // GROUP for h in range(NUM_HEADS)]

    # ---- fused / padded QKV weight (one-time, wrapper-side) ----------------
    # Q columns are scattered into their per-head 16-wide slot (zero-padded to
    # the kv-head contraction width) and pre-scaled by SCALING.
    w_a = jnp.zeros((HIDDEN, SLAB), f32)
    b_a = jnp.zeros((SLAB,), f32)
    for h in range(NUM_HEADS):
        src = slice(h * HEAD_DIM, (h + 1) * HEAD_DIM)
        lo = h * KV_SIZE + g_of[h] * HEAD_DIM
        w_a = w_a.at[:, lo:lo + HEAD_DIM].set(w_qkv[:, src] * SCALING)
        b_a = b_a.at[lo:lo + HEAD_DIM].set(b_qkv[src] * SCALING)
    w_a = w_a.at[:, K_OFF:K_OFF + KV_SIZE].set(w_qkv[:, Q_SIZE:Q_SIZE + KV_SIZE])
    b_a = b_a.at[K_OFF:K_OFF + KV_SIZE].set(b_qkv[Q_SIZE:Q_SIZE + KV_SIZE])
    w_a = w_a.at[:, V_OFF:V_OFF + KV_SIZE].set(w_qkv[:, Q_SIZE + KV_SIZE:])
    b_a = b_a.at[V_OFF:V_OFF + KV_SIZE].set(b_qkv[Q_SIZE + KV_SIZE:])

    # Signed pair-swap permutation on the rotary lanes only; folding it into a
    # second set of projection columns removes all RoPE permutation work from
    # the kernel (no perm matmuls, no rolls).
    rot_bases = ([h * KV_SIZE + g_of[h] * HEAD_DIM for h in range(NUM_HEADS)]
                 + [K_OFF + kv * HEAD_DIM for kv in range(NUM_KV_HEADS)])
    perm = jnp.zeros((SLAB, SLAB), f32)
    for o in rot_bases:
        for i in range(ROT_DIM // 2):
            perm = perm.at[o + 2 * i + 1, o + 2 * i].set(-1.0)
            perm = perm.at[o + 2 * i, o + 2 * i + 1].set(1.0)
    w_ab = jnp.concatenate([w_a, w_a @ perm], axis=1)          # (32, 256)
    b_ab = jnp.concatenate([b_a, b_a @ perm])[None, :]         # (1, 256)

    # ---- RoPE cos/sin tables in the padded slab layout ---------------------
    inv_freq = 1.0 / (ROPE_BASE ** (jnp.arange(0, ROT_DIM, 2, dtype=f32)
                                    / ROT_DIM))
    ang = position_ids.reshape(B * T).astype(f32)[:, None] * inv_freq
    cos_h = jnp.concatenate([jnp.repeat(jnp.cos(ang), 2, axis=-1),
                             jnp.ones((B * T, HEAD_DIM - ROT_DIM), f32)], -1)
    sin_h = jnp.concatenate([jnp.repeat(jnp.sin(ang), 2, axis=-1),
                             jnp.zeros((B * T, HEAD_DIM - ROT_DIM), f32)], -1)
    cos_tab = jnp.ones((B * T, SLAB), f32)
    sin_tab = jnp.zeros((B * T, SLAB), f32)
    for o in rot_bases:
        cos_tab = cos_tab.at[:, o:o + HEAD_DIM].set(cos_h)
        sin_tab = sin_tab.at[:, o:o + HEAD_DIM].set(sin_h)

    # ---- additive block-diagonal causal mask, tiled over all head blocks ---
    r = jnp.arange(BLOCK_TOKENS)
    r_seq, r_tok = r // SEQ, r % SEQ
    allowed = (r_seq[:, None] == r_seq[None, :]) & \
              (r_tok[None, :] <= r_tok[:, None])
    mask = jnp.tile(jnp.where(allowed, 0.0, -1e30).astype(f32),
                    (NUM_HEADS, 1))                            # (NH*BT, BT)

    out_flat = pl.pallas_call(
        glm_attention_kernel,
        out_shape=jax.ShapeDtypeStruct((SEQ, nblk * G * HIDDEN), f32),
        grid=(nblk,),
        in_specs=[
            pl.BlockSpec((BLOCK_TOKENS, HIDDEN), lambda i: (i, 0)),    # x
            pl.BlockSpec((BLOCK_TOKENS, SLAB), lambda i: (i, 0)),      # cos
            pl.BlockSpec((BLOCK_TOKENS, SLAB), lambda i: (i, 0)),      # sin
            pl.BlockSpec((STACKED, BLOCK_TOKENS), lambda i: (0, 0)),   # mask
            pl.BlockSpec((HIDDEN, 2 * SLAB), lambda i: (0, 0)),        # w_ab
            pl.BlockSpec((1, 2 * SLAB), lambda i: (0, 0)),             # b_ab
            pl.BlockSpec((Q_SIZE, HIDDEN), lambda i: (0, 0)),          # w_dense
        ],
        out_specs=pl.BlockSpec((SEQ, G * HIDDEN), lambda i: (0, i)),   # lane-dense
        compiler_params=pltpu.CompilerParams(
            dimension_semantics=("parallel",)),
    )(x_flat, cos_tab, sin_tab, mask, w_ab, b_ab, w_dense.astype(f32))

    # (T, B*HIDDEN) lane-dense slab -> (B, T, HIDDEN) (wrapper-side plumbing)
    return out_flat.reshape(SEQ, B, HIDDEN).transpose(1, 0, 2)


# ----------------------- pure-JAX reference (for check) -----------------------
def glm_attention_ref(hidden_states, position_ids, w_qkv, b_qkv, w_dense):
    T = hidden_states.shape[0]
    qkv = hidden_states @ w_qkv + b_qkv
    q = qkv[:, :Q_SIZE].reshape(T, NUM_HEADS, HEAD_DIM)
    k = qkv[:, Q_SIZE:Q_SIZE + KV_SIZE].reshape(T, NUM_KV_HEADS, HEAD_DIM)
    v = qkv[:, Q_SIZE + KV_SIZE:].reshape(T, NUM_KV_HEADS, HEAD_DIM)

    inv_freq = 1.0 / (ROPE_BASE ** (jnp.arange(0, ROT_DIM, 2,
                                               dtype=jnp.float32) / ROT_DIM))
    ang = position_ids.astype(jnp.float32)[:, None] * inv_freq[None, :]
    cos, sin = jnp.cos(ang), jnp.sin(ang)

    def rope(x):
        rot, rest = x[..., :ROT_DIM], x[..., ROT_DIM:]
        x1, x2 = rot[..., 0::2], rot[..., 1::2]
        c, s = cos[:, None, :], sin[:, None, :]
        o1 = x1 * c - x2 * s
        o2 = x2 * c + x1 * s
        out_rot = jnp.stack([o1, o2], axis=-1).reshape(x.shape[:-1] + (ROT_DIM,))
        return jnp.concatenate([out_rot, rest], axis=-1)

    q, k = rope(q), rope(k)
    k = jnp.repeat(k, GROUP, axis=1)
    v = jnp.repeat(v, GROUP, axis=1)
    s = jnp.einsum('tnd,snd->nts', q, k) * SCALING
    causal = jnp.tril(jnp.ones((T, T), bool))
    s = jnp.where(causal[None], s, -jnp.inf)
    p = jax.nn.softmax(s, axis=-1)
    ctx = jnp.einsum('nts,snd->tnd', p, v).reshape(T, NUM_HEADS * HEAD_DIM)
    return ctx @ w_dense


if __name__ == "__main__":
    key = jax.random.PRNGKey(0)
    k1, k2, k3, k4 = jax.random.split(key, 4)
    B = 32   # 4 grid steps of 8 packed sequences each (>= 2 steps per TC on v7x)
    hidden_states = jax.random.normal(k1, (B, SEQ, HIDDEN), jnp.float32)
    position_ids = jnp.tile(jnp.arange(SEQ, dtype=jnp.int32)[None, :], (B, 1))
    # deterministic synthetic parameters (QKVParallelLinear / RowParallelLinear)
    w_qkv = jax.random.normal(k2, (HIDDEN, QKV_SIZE), jnp.float32) * HIDDEN ** -0.5
    b_qkv = jax.random.normal(k3, (QKV_SIZE,), jnp.float32) * 0.02
    w_dense = jax.random.normal(k4, (Q_SIZE, HIDDEN), jnp.float32) * Q_SIZE ** -0.5

    out = jax.block_until_ready(
        glm_attention(hidden_states, position_ids, w_qkv, b_qkv, w_dense))

    ref = jax.vmap(
        lambda h, p: glm_attention_ref(h, p, w_qkv, b_qkv, w_dense)
    )(hidden_states, position_ids)

    err = float(jnp.max(jnp.abs(out - ref)))
    assert out.shape == ref.shape
    assert jnp.allclose(out, ref, atol=2e-3, rtol=2e-3), err
    print("KERNEL_OK")
</pallas_src>

<mosaic_0001>
module attributes {stable_mosaic.version = 11 : i64} {
  func.func @glm_attention_kernel(%arg0: i32, %arg1: memref<64x32xf32, #tpu.memory_space<vmem>>, %arg2: memref<64x128xf32, #tpu.memory_space<vmem>>, %arg3: memref<64x128xf32, #tpu.memory_space<vmem>>, %arg4: memref<256x64xf32, #tpu.memory_space<vmem>>, %arg5: memref<32x256xf32, #tpu.memory_space<vmem>>, %arg6: memref<1x256xf32, #tpu.memory_space<vmem>>, %arg7: memref<32x32xf32, #tpu.memory_space<vmem>>, %arg8: memref<8x256xf32, #tpu.memory_space<vmem>>) attributes {dimension_semantics = [#tpu.dimension_semantics<parallel>], iteration_bounds = array<i64: 4>, scalar_prefetch = 0 : i64, scratch_operands = 0 : i64, tpu.core_type = #tpu.core_type<tc>, window_params = [{transform_indices = @transform_0, window_bounds = array<i64: 64, 32>}, {transform_indices = @transform_1, window_bounds = array<i64: 64, 128>}, {transform_indices = @transform_2, window_bounds = array<i64: 64, 128>}, {pipeline_mode = #tpu.pipeline_mode<synchronous>, transform_indices = @transform_3, window_bounds = array<i64: 256, 64>}, {pipeline_mode = #tpu.pipeline_mode<synchronous>, transform_indices = @transform_4, window_bounds = array<i64: 32, 256>}, {pipeline_mode = #tpu.pipeline_mode<synchronous>, transform_indices = @transform_5, window_bounds = array<i64: 1, 256>}, {pipeline_mode = #tpu.pipeline_mode<synchronous>, transform_indices = @transform_6, window_bounds = array<i64: 32, 32>}, {transform_indices = @transform_7, window_bounds = array<i64: 8, 256>}]} {
    %c0 = arith.constant 0 : index
    %c0_0 = arith.constant 0 : index
    %0 = vector.load %arg1[%c0, %c0_0] : memref<64x32xf32, #tpu.memory_space<vmem>>, vector<64x32xf32>
    %c0_1 = arith.constant 0 : index
    %c0_2 = arith.constant 0 : index
    %1 = vector.load %arg5[%c0_1, %c0_2] : memref<32x256xf32, #tpu.memory_space<vmem>>, vector<32x256xf32>
    %cst = arith.constant dense<0.000000e+00> : vector<64x256xf32>
    %2 = tpu.matmul %0, %1, %cst {dimension_numbers = #tpu.dot_dimension_numbers<[1], [0], [0], [1], [0, 0, 1, 1], [], []>} : vector<64x32xf32>, vector<32x256xf32>, vector<64x256xf32> -> vector<64x256xf32>
    %c0_3 = arith.constant 0 : index
    %c0_4 = arith.constant 0 : index
    %3 = vector.load %arg6[%c0_3, %c0_4] : memref<1x256xf32, #tpu.memory_space<vmem>>, vector<1x256xf32>
    %4 = vector.broadcast %3 : vector<1x256xf32> to vector<64x256xf32>
    %5 = arith.addf %2, %4 : vector<64x256xf32>
    %6 = vector.extract_strided_slice %5 {offsets = [0, 0], sizes = [64, 128], strides = [1, 1]} : vector<64x256xf32> to vector<64x128xf32>
    %c0_5 = arith.constant 0 : index
    %c0_6 = arith.constant 0 : index
    %7 = vector.load %arg2[%c0_5, %c0_6] : memref<64x128xf32, #tpu.memory_space<vmem>>, vector<64x128xf32>
    %8 = arith.mulf %6, %7 : vector<64x128xf32>
    %9 = vector.extract_strided_slice %5 {offsets = [0, 128], sizes = [64, 128], strides = [1, 1]} : vector<64x256xf32> to vector<64x128xf32>
    %c0_7 = arith.constant 0 : index
    %c0_8 = arith.constant 0 : index
    %10 = vector.load %arg3[%c0_7, %c0_8] : memref<64x128xf32, #tpu.memory_space<vmem>>, vector<64x128xf32>
    %11 = arith.mulf %9, %10 : vector<64x128xf32>
    %12 = arith.addf %8, %11 : vector<64x128xf32>
    %13 = vector.extract_strided_slice %12 {offsets = [0, 64], sizes = [64, 16], strides = [1, 1]} : vector<64x128xf32> to vector<64x16xf32>
    %14 = vector.extract_strided_slice %12 {offsets = [0, 80], sizes = [64, 16], strides = [1, 1]} : vector<64x128xf32> to vector<64x16xf32>
    %15 = vector.extract_strided_slice %12 {offsets = [0, 0], sizes = [64, 16], strides = [1, 1]} : vector<64x128xf32> to vector<64x16xf32>
    %16 = vector.extract_strided_slice %12 {offsets = [0, 16], sizes = [64, 16], strides = [1, 1]} : vector<64x128xf32> to vector<64x16xf32>
    %17 = vector.extract_strided_slice %12 {offsets = [0, 32], sizes = [64, 16], strides = [1, 1]} : vector<64x128xf32> to vector<64x16xf32>
    %18 = vector.extract_strided_slice %12 {offsets = [0, 48], sizes = [64, 16], strides = [1, 1]} : vector<64x128xf32> to vector<64x16xf32>
    %19 = tpu.concatenate %15, %16, %17, %18 in 0 : vector<64x16xf32>, vector<64x16xf32>, vector<64x16xf32>, vector<64x16xf32> -> vector<256x16xf32>
    %cst_9 = arith.constant dense<0.000000e+00> : vector<256x64xf32>
    %20 = tpu.matmul %19, %13, %cst_9 {dimension_numbers = #tpu.dot_dimension_numbers<[1], [1], [0], [0], [0, 0, 1, 0], [], []>} : vector<256x16xf32>, vector<64x16xf32>, vector<256x64xf32> -> vector<256x64xf32>
    %c0_10 = arith.constant 0 : index
    %c0_11 = arith.constant 0 : index
    %21 = vector.load %arg4[%c0_10, %c0_11] : memref<256x64xf32, #tpu.memory_space<vmem>>, vector<256x64xf32>
    %22 = arith.addf %20, %21 : vector<256x64xf32>
    %cst_12 = arith.constant dense<0xFF800000> : vector<256xf32>
    %23 = vector.multi_reduction <maximumf>, %22, %cst_12 [1] : vector<256x64xf32> to vector<256xf32>
    %24 = vector.shape_cast %23 : vector<256xf32> to vector<256x1xf32>
    %25 = vector.broadcast %24 : vector<256x1xf32> to vector<256x64xf32>
    %26 = arith.subf %22, %25 : vector<256x64xf32>
    %27 = math.exp %26 : vector<256x64xf32>
    %cst_13 = arith.constant dense<0.000000e+00> : vector<256xf32>
    %28 = vector.multi_reduction <add>, %27, %cst_13 [1] : vector<256x64xf32> to vector<256xf32>
    %29 = vector.shape_cast %28 : vector<256xf32> to vector<256x1xf32>
    %cst_14 = arith.constant dense<0.000000e+00> : vector<256x16xf32>
    %30 = tpu.matmul %27, %14, %cst_14 {dimension_numbers = #tpu.dot_dimension_numbers<[1], [0], [0], [1], [0, 0, 1, 1], [], []>} : vector<256x64xf32>, vector<64x16xf32>, vector<256x16xf32> -> vector<256x16xf32>
    %31 = vector.broadcast %29 : vector<256x1xf32> to vector<256x16xf32>
    %32 = arith.divf %30, %31 : vector<256x16xf32>
    %33 = vector.extract_strided_slice %32 {offsets = [0, 0], sizes = [64, 8], strides = [1, 1]} : vector<256x16xf32> to vector<64x8xf32>
    %34 = vector.extract_strided_slice %32 {offsets = [64, 0], sizes = [64, 8], strides = [1, 1]} : vector<256x16xf32> to vector<64x8xf32>
    %35 = vector.extract_strided_slice %32 {offsets = [128, 8], sizes = [64, 8], strides = [1, 1]} : vector<256x16xf32> to vector<64x8xf32>
    %36 = vector.extract_strided_slice %32 {offsets = [192, 8], sizes = [64, 8], strides = [1, 1]} : vector<256x16xf32> to vector<64x8xf32>
    %37 = tpu.concatenate %33, %34, %35, %36 in 1 : vector<64x8xf32>, vector<64x8xf32>, vector<64x8xf32>, vector<64x8xf32> -> vector<64x32xf32>
    %c0_15 = arith.constant 0 : index
    %c0_16 = arith.constant 0 : index
    %38 = vector.load %arg7[%c0_15, %c0_16] : memref<32x32xf32, #tpu.memory_space<vmem>>, vector<32x32xf32>
    %cst_17 = arith.constant dense<0.000000e+00> : vector<64x32xf32>
    %39 = tpu.matmul %37, %38, %cst_17 {dimension_numbers = #tpu.dot_dimension_numbers<[1], [0], [0], [1], [0, 0, 1, 1], [], []>} : vector<64x32xf32>, vector<32x32xf32>, vector<64x32xf32> -> vector<64x32xf32>
    %40 = vector.extract_strided_slice %39 {offsets = [0, 0], sizes = [8, 32], strides = [1, 1]} : vector<64x32xf32> to vector<8x32xf32>
    %41 = vector.extract_strided_slice %39 {offsets = [8, 0], sizes = [8, 32], strides = [1, 1]} : vector<64x32xf32> to vector<8x32xf32>
    %42 = vector.extract_strided_slice %39 {offsets = [16, 0], sizes = [8, 32], strides = [1, 1]} : vector<64x32xf32> to vector<8x32xf32>
    %43 = vector.extract_strided_slice %39 {offsets = [24, 0], sizes = [8, 32], strides = [1, 1]} : vector<64x32xf32> to vector<8x32xf32>
    %44 = vector.extract_strided_slice %39 {offsets = [32, 0], sizes = [8, 32], strides = [1, 1]} : vector<64x32xf32> to vector<8x32xf32>
    %45 = vector.extract_strided_slice %39 {offsets = [40, 0], sizes = [8, 32], strides = [1, 1]} : vector<64x32xf32> to vector<8x32xf32>
    %46 = vector.extract_strided_slice %39 {offsets = [48, 0], sizes = [8, 32], strides = [1, 1]} : vector<64x32xf32> to vector<8x32xf32>
    %47 = vector.extract_strided_slice %39 {offsets = [56, 0], sizes = [8, 32], strides = [1, 1]} : vector<64x32xf32> to vector<8x32xf32>
    %48 = tpu.concatenate %40, %41, %42, %43, %44, %45, %46, %47 in 1 : vector<8x32xf32>, vector<8x32xf32>, vector<8x32xf32>, vector<8x32xf32>, vector<8x32xf32>, vector<8x32xf32>, vector<8x32xf32>, vector<8x32xf32> -> vector<8x256xf32>
    %c0_18 = arith.constant 0 : index
    %c0_19 = arith.constant 0 : index
    %49 = vector.load %arg8[%c0_18, %c0_19] : memref<8x256xf32, #tpu.memory_space<vmem>>, vector<8x256xf32>
    tpu.vector_store %arg8[%c0_18, %c0_19], %48 {strides = array<i32>} : memref<8x256xf32, #tpu.memory_space<vmem>>, vector<8x256xf32>,
    return
  }
  func.func @transform_0(%arg0: i32) -> (i32, i32) {
    %c0_i32 = arith.constant 0 : i32
    %c0_i32_0 = arith.constant 0 : i32
    return %arg0, %c0_i32 : i32, i32
  }
  func.func @transform_1(%arg0: i32) -> (i32, i32) {
    %c0_i32 = arith.constant 0 : i32
    %c0_i32_0 = arith.constant 0 : i32
    return %arg0, %c0_i32 : i32, i32
  }
  func.func @transform_2(%arg0: i32) -> (i32, i32) {
    %c0_i32 = arith.constant 0 : i32
    %c0_i32_0 = arith.constant 0 : i32
    return %arg0, %c0_i32 : i32, i32
  }
  func.func @transform_3(%arg0: i32) -> (i32, i32) {
    %c0_i32 = arith.constant 0 : i32
    %c0_i32_0 = arith.constant 0 : i32
    %c0_i32_1 = arith.constant 0 : i32
    return %c0_i32, %c0_i32_0 : i32, i32
  }
  func.func @transform_4(%arg0: i32) -> (i32, i32) {
    %c0_i32 = arith.constant 0 : i32
    %c0_i32_0 = arith.constant 0 : i32
    %c0_i32_1 = arith.constant 0 : i32
    return %c0_i32, %c0_i32_0 : i32, i32
  }
  func.func @transform_5(%arg0: i32) -> (i32, i32) {
    %c0_i32 = arith.constant 0 : i32
    %c0_i32_0 = arith.constant 0 : i32
    %c0_i32_1 = arith.constant 0 : i32
    return %c0_i32, %c0_i32_0 : i32, i32
  }
  func.func @transform_6(%arg0: i32) -> (i32, i32) {
    %c0_i32 = arith.constant 0 : i32
    %c0_i32_0 = arith.constant 0 : i32
    %c0_i32_1 = arith.constant 0 : i32
    return %c0_i32, %c0_i32_0 : i32, i32
  }
  func.func @transform_7(%arg0: i32) -> (i32, i32) {
    %c0_i32 = arith.constant 0 : i32
    %c0_i32_0 = arith.constant 0 : i32
    return %c0_i32, %arg0 : i32, i32
  }
}

</mosaic_0001>

<bundles_post_ra>
// kernel: tpu_custom_call.1
= control target key start
LH: loop header
LB: loop body
LE: loop exit
PB: predicated region body
PF: predicated region fallthrough
CT: control target
= control target key end

     0   :  { %12 = vsyncpa [#allocation3], 0  ;;  %s3983_s0 = inlined_call_operand.vmem [shape: f32[256,32], index: 0, kind: input, shape index: {}]   ;;  %s3984_s1 = inlined_call_operand.vmem [shape: f32[256,128], index: 1, kind: input, shape index: {}]   ;;  %s3985_s2 = inlined_call_operand.vmem [shape: f32[256,128], index: 2, kind: input, shape index: {}]   ;;  %s3986_s3 = inlined_call_operand.vmem [shape: f32[256,64], index: 3, kind: input, shape index: {}]   ;;  %s3987_s4 = inlined_call_operand.vmem [shape: f32[32,256], index: 4, kind: input, shape index: {}]   ;;  %s3988_s5 = inlined_call_operand.hbm [shape: f32[1,256], index: 5, kind: input, shape index: {}]   ;;  %s3989_s6 = inlined_call_operand.hbm [shape: f32[32,32], index: 6, kind: input, shape index: {}]   ;;  %s3990_s7 = inlined_call_operand.hbm [shape: f32[8,1024], index: 7, kind: output, shape index: {}]  }
   0x1   :  { %13 = vsyncpa [#allocation6], 0 }
   0x2   :  { %14 = vsyncpa [#allocation4], 0 }
   0x3   :  { %16 = vsyncpa [#allocation4 + $0x1], 0  ;;  %s2710_s24 = smov 0   ;;  %s2712_s25 = smov 0  }
   0x4   :  { %s2714_s26 = smov 0   ;;  %s2716_s27 = smov 0  }
   0x5 LB: > { %s2731_s28 = sadd.s32 4294967295, %s2656_s27   ;;  %s2171_s29 = sadd.s32 4294967294, %s2656_s27   ;;  %s2656_s27 = sphi %s2716_s27, %s4023_s27   ;;  %s2652_s26 = sphi %s2714_s26, %s4022_s26   ;;  %s2648_s25 = sphi %s2712_s25, %s4021_s25   ;;  %s2644_s24 = sphi %s2710_s24, %s4020_s24  }
   0x6   : > { %s2735_s30 = sadd.s32 1, %s2656_s27   ;;  %s191_s8 = sadd.s32 1, %s2652_s26 }
   0x7   : > { %s188_s9 = ssub.s32 %s2656_s27, %s2735_s30  ;;  %p201_p0 = scmp.ne.s32.totalorder %s2652_s26, %s2648_s25 }
   0x8   : > { %p189_p1 = scmp.eq.s32.totalorder %s188_s9, 0  ;;  %p202_p2 = scmp.eq.s32.totalorder %s2731_s28, 3 }
   0x9   : > { %p207_p3 = scmp.ne.s32.totalorder %s2648_s25, %s2644_s24  ;;  %p208_p4 = scmp.eq.s32.totalorder %s2171_s29, 3 }
   0xa   : > { %s2746_s10 = scalar_select %p189_p1, %s2652_s26, %s191_s8  }
   0xb   : > { %p2748_p5 = por %p202_p2, %p201_p0  ;;  %p2752_p6 = por %p208_p4, %p207_p3 }
   0xc   : > { %p2172_p7 = scmp.ge.s32.totalorder %s2656_s27, 1  ;;  %p215_p8 = scmp.lt.s32.totalorder %s2656_s27, 5 }
   0xd   : > { %p2329_p9 = scmp.eq.s32.totalorder %s2731_s28, 0  ;;  %s233_s16 = sshll.u32 %s3988_s5, 4  ;;  %s234_s16 = int_to_ptr.hbm [resolvable:$true] %s233_s16 }
   0xe   : > { %p2759_p10 = pnand %p2172_p7, %p215_p8  ;;  %s2658_s17 = smov [#allocation2]  }
   0xf   : > { %s235_s18 = sshll.u32 %s2658_s17, 4  ;;  %s244_s21 = sshll.u32 %s3989_s6, 4  ;;  %s236_s18 = int_to_ptr.vmem [resolvable:$true] %s235_s18  ;;  %s245_s21 = int_to_ptr.hbm [resolvable:$true] %s244_s21 }
  0x10   : > { %p2318_p11 = pneg %p2759_p10  ;;  %s2659_s22 = smov [#allocation5]  }
  0x11   : > { %s246_s23 = sshll.u32 %s2659_s22, 4  ;;  %s2660_s29 = smov 128   ;;  %s247_s23 = int_to_ptr.vmem [resolvable:$true] %s246_s23 }
  0x12   : > { %p2319_p12 = pnand %p2329_p9, %p2318_p11  ;;  %s2661_s8 = smov 8  }
  0x13   : > { %289 = sbr.rel (%p2759_p10) target bundleno = 1457 (0x5b1), region = 48 }
  0x14   : > { %2321 = dma.hbm_to_vmem [thread:$0]  (!%p2319_p12), %s234_s16, 32, %s236_s18, [#allocation3]  }
  0x15   : > { %2324 = dma.hbm_to_vmem [thread:$0]  (!%p2319_p12), %s245_s21, 512, %s247_s23, [#allocation6], %s2660_s29, %s2660_s29, %s2661_s8  }
  0x18   : > { %2631 = dma.done.wait (%p2329_p9), [#allocation3], 32  }
  0x19   : > { %2633 = vsyncadd (%p2329_p9), [#allocation3], 4294967264 }
  0x1a   : > { %2635 = dma.done.wait (%p2329_p9), [#allocation6], 512  }
  0x1b   : > { %2637 = vsyncadd (%p2329_p9), [#allocation6], 4294966784  ;;  %s2180_s9 = sshll.u32 %s2731_s28, 3  ;;  %v370_v0 = vld [vmem:[%s3987_s4 + $0x30] sm:$0xff]  ;;  %v368_v1 = vld [vmem:[%s3987_s4 + $0x20] sm:$0xff]  ;;  %vm378_vm0 = vcmask 261120  }
  0x1c   : > { %p338_p13 = scmp.lt.s32.totalorder %s2180_s9, 31  ;;  %2288 = vmatpush.msra.mxu1 %v370_v0  ;;  %415 = vmatpush.msra.mxu0 %v370_v0  ;;  %v366_v2 = vld [vmem:[%s3987_s4 + $0x10] sm:$0xff]  ;;  %v364_v3 = vld [vmem:[%s3987_s4] sm:$0xff]  ;;  %v371_v6 = vld [vmem:[%s3987_s4 + $0x38] sm:$0xff]  ;;  %s2664_s13 = smov 96   ;;  %vm629_vm1 = vcmask 130048  }
  0x1d   : > { %v369_v7 = vld [vmem:[%s3987_s4 + $0x28] sm:$0xff]  ;;  %v367_v8 = vld [vmem:[%s3987_s4 + $0x18] sm:$0xff]  ;;  %v372_v16 = vld [vmem:[#allocation2] sm:$0x3]  ;;  %s2665_s15 = smov 80   ;;  %s2666_s16 = smov 48  }
  0x1e   : > { %s4025_s9 = smov (!%p338_p13, %s2180_s9), 31  ;;  %2289 = vmatpush.msra.mxu1 %v368_v1  ;;  %416 = vmatpush.msra.mxu0 %v368_v1  ;;  %v365_v9 = vld [vmem:[%s3987_s4 + $0x8] sm:$0xff]  ;;  %v2846_v17 = vperm.slane %v372_v16, 0  ;;  %v375_v39 = vperm.slane %v372_v16, 1  ;;  %vm823_vm2 = vcmask 523264   ;;  %s2667_s21 = smov 8  }
  0x1f   : > { %s2784_s14 = sshll.u32 %s4025_s9, 3  ;;  %s2663_s9 = smov 112  }
  0x20   : > { %s2799_s22 = scalar_lea.vmem %s3983_s0, %s2784_s14  ;;  %2290 = vmatpush.msra.mxu1 %v366_v2  ;;  %417 = vmatpush.msra.mxu0 %v366_v2  ;;  %s2862_s8 = scalar_lea.vmem %s3985_s2, %s2784_s14 }
  0x21   : > { %v361_v4 = vld [vmem:[%s2799_s22 + $0x28] sm:$0xff]  ;;  %v356_v5 = vld [vmem:[%s2799_s22] sm:$0xff]  ;;  %v362_v10 = vld [vmem:[%s2799_s22 + $0x30] sm:$0xff]  ;;  %s2669_s23 = smov 32   ;;  %s334_s29 = sand.u32 1, %s2648_s25  }
  0x22   : > { %2291 = vmatpush.msra.mxu1 %v364_v3  ;;  %418 = vmatpush.msra.mxu0 %v364_v3  ;;  %v357_v11 = vld [vmem:[%s2799_s22 + $0x8] sm:$0xff]  ;;  %v363_v12 = vld [vmem:[%s2799_s22 + $0x38] sm:$0xff]  ;;  %v358_v13 = vld [vmem:[%s2799_s22 + $0x10] sm:$0xff]  ;;  %s2050_s19 = scalar_lea.sflag [#allocation4], %s334_s29 }
  0x23   : > { %2191 = vmatmul.msk.f32.vlgmr.msra.gmra.mxu1 %vm378_vm0, %v361_v4  ;;  %2186 = vmatmul.msk.f32.vlgmr.msra.gmra.mxu0 %vm378_vm0, %v356_v5  ;;  %v359_v14 = vld [vmem:[%s2799_s22 + $0x18] sm:$0xff]  ;;  %v360_v15 = vld [vmem:[%s2799_s22 + $0x20] sm:$0xff]  ;;  %s2844_s22 = scalar_lea.vmem %s3984_s1, %s2784_s14  ;;  %v503_v49 = vld [vmem:[%s2862_s8 + $0x10] sm:$0xff]  ;;  %s2662_s14 = smov 64  }
  0x24   : > { %456 = vmatpush.msrb.mxu1 %v371_v6  ;;  %v490_v19 = vld [vmem:[%s2844_s22 + $0x28] sm:$0xff]  ;;  %v491_v23 = vld [vmem:[%s2844_s22 + $0x30] sm:$0xff]  ;;  %v492_v28 = vld [vmem:[%s2844_s22 + $0x38] sm:$0xff] }
  0x25   : > { %v488_v38 = vld [vmem:[%s2844_s22 + $0x18] sm:$0xff]  ;;  %v487_v48 = vld [vmem:[%s2844_s22 + $0x10] sm:$0xff]  ;;  %v485_v56 = vld [vmem:[%s2844_s22] sm:$0xff] }
  0x26   : > { %457 = vmatpush.msrb.mxu1 %v369_v7  ;;  %v504_v41 = vld [vmem:[%s2862_s8 + $0x18] sm:$0xff]  ;;  %v501_v57 = vld [vmem:[%s2862_s8] sm:$0xff]  ;;  %v506_v59 = vld [vmem:[%s2862_s8 + $0x28] sm:$0xff] }
  0x27   : > { %v505_v6 = vld [vmem:[%s2862_s8 + $0x20] sm:$0xff]  ;;  %v508_v16 = vld [vmem:[%s2862_s8 + $0x38] sm:$0xff] }
  0x28   : > { %458 = vmatpush.msrb.mxu1 %v367_v8  ;;  %v507_v8 = vld [vmem:[%s2862_s8 + $0x30] sm:$0xff] }
  0x2a   : > { %459 = vmatpush.msrb.mxu1 %v365_v9 }
  0x2b   : > { %2192 = vmatmul.msk.f32.gmra.mxu1 %vm378_vm0, %v362_v10  ;;  %2187 = vmatmul.msk.f32.gmra.mxu0 %vm378_vm0, %v357_v11 }
  0x33   : > { %2193 = vmatmul.msk.f32.gmra.mxu1 %vm378_vm0, %v363_v12  ;;  %2188 = vmatmul.msk.f32.gmra.mxu0 %vm378_vm0, %v358_v13 }
  0x3b   : > { %2194 = vmatmul.msk.f32.vlgmr.msrb.gmra.mxu1 %vm378_vm0, %v356_v5  ;;  %2189 = vmatmul.msk.f32.gmra.mxu0 %vm378_vm0, %v359_v14  ;;  %v489_v5 = vld [vmem:[%s2844_s22 + $0x20] sm:$0xff] }
  0x43   : > { %2195 = vmatmul.msk.f32.gmra.mxu1 %vm378_vm0, %v357_v11  ;;  %2190 = vmatmul.msk.f32.gmra.mxu0 %vm378_vm0, %v360_v15 }
  0x4b   : > { %2196 = vmatmul.msk.f32.gmra.mxu1 %vm378_vm0, %v358_v13 }
  0x53   : > { %2197 = vmatmul.msk.f32.gmra.mxu1 %vm378_vm0, %v359_v14 }
  0x5b   : > { %2198 = vmatmul.msk.f32.gmra.mxu1 %vm378_vm0, %v360_v15 }
  0x63   : > { %2199 = vmatmul.msk.f32.gmra.mxu1 %vm378_vm0, %v361_v4 }
  0x6b   : > { %2200 = vmatmul.msk.f32.gmra.mxu1 %vm378_vm0, %v362_v10 }
  0x73   : > { %2201 = vmatmul.msk.f32.gmra.mxu1 %vm378_vm0, %v363_v12 }
  0xa0   : > { %v435_v18 = vpop.f32.mrf.mxu1  ;;  %v420_v26 = vpop.f32.mrf.mxu0 }
  0xa1   : > { %v436_v20 = vadd.f32 %v435_v18, %v2846_v17  ;;  %v421_v53 = vadd.f32 %v420_v26, %v2846_v17 }
  0xa3   : > { %v498_v21 = vmul.f32 %v490_v19, %v436_v20  ;;  %v493_v60 = vmul.f32 %v485_v56, %v421_v53 }
  0xa8   : > { %v438_v22 = vpop.f32.mrf.mxu1  ;;  %v423_v31 = vpop.f32.mrf.mxu0 }
  0xa9   : > { %v439_v24 = vadd.f32 %v438_v22, %v2846_v17  ;;  %v424_v20 = vadd.f32 %v423_v31, %v2846_v17 }
  0xab   : > { %v499_v25 = vmul.f32 %v491_v23, %v439_v24  ;;  %v486_v23 = vld [vmem:[%s2844_s22 + $0x8] sm:$0xff]  ;;  %s2668_s22 = smov 16  }
  0xac   : > { %v502_v24 = vld [vmem:[%s2862_s8 + $0x8] sm:$0xff]  ;;  %s2179_s8 = sshll.u32 %s334_s29, 4 }
  0xb0   : > { %v441_v27 = vpop.f32.mrf.mxu1  ;;  %v426_v34 = vpop.f32.mrf.mxu0 }
  0xb1   : > { %v442_v29 = vadd.f32 %v441_v27, %v2846_v17  ;;  %v427_v45 = vadd.f32 %v426_v34, %v2846_v17 }
  0xb3   : > { %v2854_v30 = vmul.f32 %v492_v28, %v442_v29  ;;  %v495_v51 = vmul.f32 %v487_v48, %v427_v45 }
  0xb8   : > { %v461_v32 = vpop.f32.mrf.mxu1  ;;  %v429_v36 = vpop.f32.mrf.mxu0 }
  0xb9   : > { %v430_v37 = vadd.f32 %v429_v36, %v2846_v17  ;;  %v462_v54 = vadd.f32 %v461_v32, %v375_v39 }
  0xbb   : > { %v496_v42 = vmul.f32 %v488_v38, %v430_v37  ;;  %v509_v61 = vmul.f32 %v501_v57, %v462_v54 }
  0xbd   : > { %v2880_v1 = vadd.f32 %v509_v61, %v493_v60 }
  0xc0   : > { %v464_v33 = vpop.f32.mrf.mxu1  ;;  %v432_v63 = vpop.f32.mrf.mxu0 }
  0xc1   : > { %v433_v2 = vadd.f32 %v432_v63, %v2846_v17 }
  0xc3   : > { %v497_v9 = vmul.f32 %v489_v5, %v433_v2 }
  0xc8   : > { %v467_v35 = vpop.f32.mrf.mxu1 }
  0xc9   : > { %v468_v46 = vadd.f32 %v467_v35, %v375_v39 }
  0xcb   : > { %v511_v52 = vmul.f32 %v503_v49, %v468_v46 }
  0xcd   : > { %v2873_v55 = vadd.f32 %v511_v52, %v495_v51 }
  0xd0   : > { %v470_v40 = vpop.f32.mrf.mxu1 }
  0xd1   : > { %v471_v43 = vadd.f32 %v470_v40, %v375_v39 }
  0xd3   : > { %v512_v44 = vmul.f32 %v504_v41, %v471_v43 }
  0xd5   : > { %v2866_v47 = vadd.f32 %v512_v44, %v496_v42 }
  0xd7   : > { %619 = vrot.lane.b32.xlu2 %v2866_v47, %s2662_s14  ;;  %v2388_v28 = vpack.i.bf16 %v2873_v55, %v2866_v47 }
  0xd8   : > { %v473_v50 = vpop.f32.mrf.mxu1 }
  0xd9   : > { %v474_v3 = vadd.f32 %v473_v50, %v375_v39 }
  0xdb   : > { %v513_v10 = vmul.f32 %v505_v6, %v474_v3 }
  0xdd   : > { %v2892_v13 = vadd.f32 %v513_v10, %v497_v9 }
  0xdf   : > { %617 = vrot.lane.b32.xlu2 %v2873_v55, %s2662_s14 }
  0xe0   : > { %v476_v58 = vpop.f32.mrf.mxu1 }
  0xe1   : > { %v477_v62 = vadd.f32 %v476_v58, %v375_v39 }
  0xe3   : > { %v514_v0 = vmul.f32 %v506_v59, %v477_v62 }
  0xe5   : > { %v2883_v4 = vadd.f32 %v514_v0, %v498_v21  ;;  %v465_v21 = vadd.f32 %v464_v33, %v375_v39 }
  0xe7   : > { %623 = vrot.lane.b32.xlu1 %v2883_v4, %s2662_s14  ;;  %533 = vrot.lane.b32.xlu2 %v2880_v1, %s2663_s9  ;;  %v510_v26 = vmul.f32 %v502_v24, %v465_v21  ;;  %v2383_v32 = vpack.i.bf16 %v2892_v13, %v2883_v4  ;;  %v597_v24 = vld [vmem:[%s3986_s3 + $0x80] sm:$0xff] }
  0xe8   : > { %v479_v7 = vpop.f32.mrf.mxu1 }
  0xe9   : > { %v480_v11 = vadd.f32 %v479_v7, %v375_v39 }
  0xeb   : > { %v515_v12 = vmul.f32 %v507_v8, %v480_v11  ;;  %v593_v11 = vld [vmem:[%s3986_s3 + $0x60] sm:$0xff] }
  0xed   : > { %v2894_v14 = vadd.f32 %v515_v12, %v499_v25  ;;  %v494_v25 = vmul.f32 %v486_v23, %v424_v20 }
  0xef   : > { %621 = vrot.lane.b32.xlu1 %v2892_v13, %s2662_s14  ;;  %539 = vrot.lane.b32.xlu2 %v2866_v47, %s2663_s9  ;;  %v2913_v27 = vadd.f32 %v510_v26, %v494_v25 }
  0xf0   : > { %v482_v15 = vpop.f32.mrf.mxu1 }
  0xf1   : > { %v483_v18 = vadd.f32 %v482_v15, %v375_v39 }
  0xf3   : > { %v516_v19 = vmul.f32 %v508_v16, %v483_v18 }
  0xf5   : > { %v2903_v22 = vadd.f32 %v516_v19, %v2854_v30  ;;  %v2393_v30 = vpack.i.bf16 %v2880_v1, %v2913_v27 }
  0xf7   : > { %627 = vrot.lane.b32.xlu0 %v2903_v22, %s2662_s14  ;;  %545 = vrot.lane.b32.xlu2 %v2894_v14, %s2663_s9  ;;  %v2378_v17 = vpack.i.bf16 %v2894_v14, %v2903_v22 }
  0xf8   : > { %613 = vrot.lane.b32.xlu1 %v2880_v1, %s2662_s14 }
  0xff   : > { %625 = vrot.lane.b32.xlu0 %v2894_v14, %s2662_s14  ;;  %551 = vrot.lane.b32.xlu2 %v2913_v27, %s2664_s13 }
 0x100   : > { %537 = vrot.lane.b32.xlu1 %v2873_v55, %s2663_s9 }
 0x107   : > { %615 = vrot.lane.b32.xlu0 %v2913_v27, %s2662_s14  ;;  %557 = vrot.lane.b32.xlu2 %v2892_v13, %s2664_s13 }
 0x108   : > { %543 = vrot.lane.b32.xlu1 %v2883_v4, %s2663_s9 }
 0x10f   : > { %535 = vrot.lane.b32.xlu0 %v2913_v27, %s2663_s9  ;;  %563 = vrot.lane.b32.xlu2 %v2903_v22, %s2664_s13 }
 0x110   : > { %549 = vrot.lane.b32.xlu1 %v2880_v1, %s2664_s13 }
 0x117   : > { %541 = vrot.lane.b32.xlu0 %v2892_v13, %s2663_s9  ;;  %569 = vrot.lane.b32.xlu2 %v2873_v55, %s2665_s15 }
 0x118   : > { %555 = vrot.lane.b32.xlu1 %v2866_v47, %s2664_s13 }
 0x11f   : > { %547 = vrot.lane.b32.xlu0 %v2903_v22, %s2663_s9  ;;  %575 = vrot.lane.b32.xlu2 %v2883_v4, %s2665_s15  ;;  %s336_s9 = scalar_lea.vmem [#allocation7], %s2179_s8 }
 0x120   : > { %561 = vrot.lane.b32.xlu1 %v2894_v14, %s2664_s13 }
 0x127   : > { %553 = vrot.lane.b32.xlu0 %v2873_v55, %s2664_s13  ;;  %2379 = vrot.lane.b32.xlu2 %v2378_v17, %s2666_s16 }
 0x128   : > { %567 = vrot.lane.b32.xlu1 %v2913_v27, %s2665_s15 }
 0x12f   : > { %559 = vrot.lane.b32.xlu0 %v2883_v4, %s2664_s13  ;;  %2389 = vrot.lane.b32.xlu2 %v2388_v28, %s2666_s16  ;;  %v582_v28 = vld [vmem:[%s3986_s3 + $0x8] sm:$0xff] }
 0x130   : > { %573 = vrot.lane.b32.xlu1 %v2892_v13, %s2665_s15 }
 0x131   : > { %v620_v29 = vpop.permute.xlu2 %619 }
 0x137   : > { %565 = vrot.lane.b32.xlu0 %v2880_v1, %s2665_s15  ;;  %2394 = vrot.lane.b32.xlu2 %v2393_v30, %s2666_s16 }
 0x138   : > { %579 = vrot.lane.b32.xlu1 %v2903_v22, %s2665_s15 }
 0x139   : > { %v618_v31 = vpop.permute.xlu2 %617 }
 0x13f   : > { %571 = vrot.lane.b32.xlu0 %v2866_v47, %s2665_s15 }
 0x140   : > { %2384 = vrot.lane.b32.xlu1 %v2383_v32, %s2666_s16 }
 0x141   : > { %v2960_v33 = vpop.permute.xlu2 %533 }
 0x147   : > { %577 = vrot.lane.b32.xlu0 %v2894_v14, %s2665_s15  ;;  %s2287_s15 = sshll.u32 %s2731_s28, 4 }
 0x148   : > { %s2061_s17 = scalar_lea.hbm %s3990_s7, %s2287_s15 }
 0x149   : > { %v2963_v34 = vpop.permute.xlu2 %539  ;;  %s2065_s18 = sshll.u32 %s2061_s17, 4  ;;  %s2066_s18 = int_to_ptr.hbm [resolvable:$true] %s2065_s18 }
 0x14a   : > { %s2600_s28 = sshra.s32 %s2066_s18, 4  ;;  %s2601_s28 = int_to_ptr.hbm [resolvable:$true] %s2600_s28 }
 0x14b   : > { %s2602_s20 = scalar_lea.hbm %s2601_s28, 16  ;;  %p2607_p3 = scmp.lt.s32.totalorder %s2601_s28, %s3990_s7 }
 0x14c   : > { %p2603_p0 = scmp.ne.s32.totalorder %s2601_s28, %s2602_s20 }
 0x14e   : > { %p2604_p1 = pnand %p2603_p0, %p2748_p5 }
 0x150   : > { %p2605_p2 = pneg %p2604_p1 }
 0x151   : > { %v546_v35 = vpop.permute.xlu2 %545 }
 0x159   : > { %v624_v36 = vpop.permute.xlu1 %623  ;;  %v552_v37 = vpop.permute.xlu2 %551 }
 0x161   : > { %v622_v38 = vpop.permute.xlu1 %621  ;;  %v2965_v39 = vpop.permute.xlu2 %557 }
 0x169   : > { %v628_v40 = vpop.permute.xlu0 %627  ;;  %v2967_v41 = vpop.permute.xlu2 %563 }
 0x16a   : > { %v614_v42 = vpop.permute.xlu1 %613  ;;  %2202 = vmatpush.xpose.msk.msra.mxu1 %vm629_vm1, %v628_v40  ;;  %2292 = vmatpush.xpose.msk.msra.mxu2 %vm629_vm1, %v628_v40  ;;  %v585_v40 = vld [vmem:[%s3986_s3 + $0x20] sm:$0xff] }
 0x171   : > { %v626_v43 = vpop.permute.xlu0 %625  ;;  %v2971_v44 = vpop.permute.xlu2 %569 }
 0x172   : > { %v2973_v45 = vpop.permute.xlu1 %537  ;;  %2203 = vmatpush.xpose.msk.msra.mxu1 %vm629_vm1, %v626_v43  ;;  %2293 = vmatpush.xpose.msk.msra.mxu2 %vm629_vm1, %v626_v43 }
 0x176   : > { %2204 = vmatpush.xpose.msk.msra.mxu1 %vm629_vm1, %v624_v36  ;;  %2294 = vmatpush.xpose.msk.msra.mxu2 %vm629_vm1, %v624_v36 }
 0x179   : > { %v616_v46 = vpop.permute.xlu0 %615  ;;  %v2979_v48 = vpop.permute.xlu2 %575 }
 0x17a   : > { %v544_v49 = vpop.permute.xlu1 %543  ;;  %2205 = vmatpush.xpose.msk.msra.mxu1 %vm629_vm1, %v622_v38  ;;  %2295 = vmatpush.xpose.msk.msra.mxu2 %vm629_vm1, %v622_v38 }
 0x17e   : > { %2206 = vmatpush.xpose.msk.msra.mxu1 %vm629_vm1, %v620_v29  ;;  %2296 = vmatpush.xpose.msk.msra.mxu2 %vm629_vm1, %v620_v29 }
 0x181   : > { %v2380_v50 = vpop.permute.xlu2 %2379  ;;  %v536_v51 = vpop.permute.xlu0 %535 }
 0x182   : > { %v550_v52 = vpop.permute.xlu1 %549  ;;  %2207 = vmatpush.xpose.msk.msra.mxu1 %vm629_vm1, %v618_v31  ;;  %2297 = vmatpush.xpose.msk.msra.mxu2 %vm629_vm1, %v618_v31  ;;  %v2381_v53 = vunpack.i.l.bf16 %v2380_v50  ;;  %v2382_v54 = vunpack.i.h.bf16 %v2380_v50 }
 0x184   : > { %1240 = vmatpush.msrb.mxu0 %v2381_v53  ;;  %2300 = vmatpush.msra.mxu3 %v2381_v53 }
 0x186   : > { %2208 = vmatpush.xpose.msk.msra.mxu1 %vm629_vm1, %v616_v46  ;;  %2298 = vmatpush.xpose.msk.msra.mxu2 %vm629_vm1, %v616_v46  ;;  %v591_v46 = vld [vmem:[%s3986_s3 + $0x50] sm:$0xff] }
 0x187   : > { %1241 = vmatpush.msrb.mxu0 %v2382_v54  ;;  %2301 = vmatpush.msra.mxu3 %v2382_v54  ;;  %v592_v54 = vld [vmem:[%s3986_s3 + $0x58] sm:$0xff] }
 0x189   : > { %v542_v57 = vpop.permute.xlu0 %541  ;;  %v2390_v63 = vpop.permute.xlu2 %2389 }
 0x18a   : > { %v556_v56 = vpop.permute.xlu1 %555  ;;  %2209 = vmatpush.xpose.msk.msra.mxu1 %vm629_vm1, %v614_v42  ;;  %2299 = vmatpush.xpose.msk.msra.mxu2 %vm629_vm1, %v614_v42  ;;  %v2392_v3 = vunpack.i.h.bf16 %v2390_v63 }
 0x18d   : > { %2210 = vmatmul.msk.f32.vlgmr.msra.gmra.mxu1 %vm629_vm1, %v2880_v1  ;;  %2222 = vmatmul.msk.f32.vlgmr.msra.gmra.mxu2 %vm629_vm1, %v542_v57 }
 0x191   : > { %v548_v61 = vpop.permute.xlu0 %547  ;;  %v2395_v2 = vpop.permute.xlu2 %2394 }
 0x192   : > { %v562_v58 = vpop.permute.xlu1 %561  ;;  %v2396_v5 = vunpack.i.l.bf16 %v2395_v2  ;;  %v2397_v7 = vunpack.i.h.bf16 %v2395_v2 }
 0x195   : > { %2211 = vmatmul.msk.f32.gmra.mxu1 %vm629_vm1, %v2913_v27  ;;  %2223 = vmatmul.msk.f32.gmra.mxu2 %vm629_vm1, %v544_v49 }
 0x199   : > { %v554_v6 = vpop.permute.xlu0 %553 }
 0x19a   : > { %v568_v59 = vpop.permute.xlu1 %567 }
 0x19d   : > { %2212 = vmatmul.msk.f32.gmra.mxu1 %vm629_vm1, %v2873_v55  ;;  %2224 = vmatmul.msk.f32.gmra.mxu2 %vm629_vm1, %v546_v35  ;;  %v600_v35 = vld [vmem:[%s3986_s3 + $0x98] sm:$0xff] }
 0x1a2   : > { %v574_v60 = vpop.permute.xlu1 %573 }
 0x1a5   : > { %2213 = vmatmul.msk.f32.gmra.mxu1 %vm629_vm1, %v2866_v47  ;;  %2225 = vmatmul.msk.f32.gmra.mxu2 %vm629_vm1, %v548_v61  ;;  %v2391_v47 = vunpack.i.l.bf16 %v2390_v63  ;;  %v588_v61 = vld [vmem:[%s3986_s3 + $0x38] sm:$0xff] }
 0x1aa   : > { %v580_v62 = vpop.permute.xlu1 %579 }
 0x1ad   : > { %2214 = vmatmul.msk.f32.gmra.mxu1 %vm629_vm1, %v2892_v13  ;;  %2226 = vmatmul.msk.f32.gmra.mxu2 %vm629_vm1, %v550_v52  ;;  %v603_v52 = vld [vmem:[%s3986_s3 + $0xb0] sm:$0xff] }
 0x1b2   : > { %v2385_v0 = vpop.permute.xlu1 %2384 }
 0x1b3   : > { %v2386_v1 = vunpack.i.l.bf16 %v2385_v0  ;;  %v2387_v55 = vunpack.i.h.bf16 %v2385_v0  ;;  %v595_v0 = vld [vmem:[%s3986_s3 + $0x70] sm:$0xff] }
 0x1b5   : > { %1242 = vmatpush.msrb.mxu0 %v2386_v1  ;;  %2302 = vmatpush.msra.mxu3 %v2386_v1  ;;  %v596_v1 = vld [vmem:[%s3986_s3 + $0x78] sm:$0xff] }
 0x1b6   : > { %2215 = vmatmul.msk.f32.gmra.mxu1 %vm629_vm1, %v2883_v4  ;;  %2227 = vmatmul.msk.f32.gmra.mxu2 %vm629_vm1, %v552_v37  ;;  %v560_v4 = vpop.permute.xlu0 %559 }
 0x1b7   : > { %1243 = vmatpush.msrb.mxu0 %v2387_v55  ;;  %2303 = vmatpush.msra.mxu3 %v2387_v55 }
 0x1b9   : > { %1244 = vmatpush.msrb.mxu0 %v2391_v47  ;;  %2304 = vmatpush.msra.mxu3 %v2391_v47 }
 0x1bb   : > { %1245 = vmatpush.msrb.mxu0 %v2392_v3  ;;  %2305 = vmatpush.msra.mxu3 %v2392_v3 }
 0x1bd   : > { %1246 = vmatpush.msrb.mxu0 %v2396_v5  ;;  %2306 = vmatpush.msra.mxu3 %v2396_v5 }
 0x1be   : > { %2216 = vmatmul.msk.f32.gmra.mxu1 %vm629_vm1, %v2894_v14  ;;  %2228 = vmatmul.msk.f32.gmra.mxu2 %vm629_vm1, %v554_v6  ;;  %v566_v8 = vpop.permute.xlu0 %565 }
 0x1bf   : > { %1247 = vmatpush.msrb.mxu0 %v2397_v7  ;;  %2307 = vmatpush.msra.mxu3 %v2397_v7 }
 0x1c6   : > { %2217 = vmatmul.msk.f32.gmra.mxu1 %vm629_vm1, %v2903_v22  ;;  %2229 = vmatmul.msk.f32.gmra.mxu2 %vm629_vm1, %v556_v56  ;;  %v572_v9 = vpop.permute.xlu0 %571 }
 0x1ce   : > { %2218 = vmatmul.msk.f32.gmra.mxu1 %vm629_vm1, %v2960_v33  ;;  %2230 = vmatmul.msk.f32.gmra.mxu2 %vm629_vm1, %v2965_v39  ;;  %v578_v19 = vpop.permute.xlu0 %577 }
 0x1d6   : > { %2219 = vmatmul.msk.f32.gmra.mxu1 %vm629_vm1, %v536_v51  ;;  %2231 = vmatmul.msk.f32.gmra.mxu2 %vm629_vm1, %v560_v4  ;;  %v594_v51 = vld [vmem:[%s3986_s3 + $0x68] sm:$0xff]  ;;  %v581_v4 = vld [vmem:[%s3986_s3] sm:$0xff] }
 0x1de   : > { %2220 = vmatmul.msk.f32.gmra.mxu1 %vm629_vm1, %v2973_v45  ;;  %2232 = vmatmul.msk.f32.gmra.mxu2 %vm629_vm1, %v562_v58 }
 0x1e6   : > { %2221 = vmatmul.msk.f32.gmra.mxu1 %vm629_vm1, %v2963_v34  ;;  %2233 = vmatmul.msk.f32.gmra.mxu2 %vm629_vm1, %v2967_v41 }
 0x1ee   : > { %2234 = vmatmul.msk.f32.gmra.mxu2 %vm629_vm1, %v566_v8  ;;  %v598_v8 = vld [vmem:[%s3986_s3 + $0x88] sm:$0xff] }
 0x1f6   : > { %2235 = vmatmul.msk.f32.gmra.mxu2 %vm629_vm1, %v568_v59 }
 0x1fe   : > { %2236 = vmatmul.msk.f32.gmra.mxu2 %vm629_vm1, %v2971_v44 }
 0x206   : > { %2237 = vmatmul.msk.f32.gmra.mxu2 %vm629_vm1, %v572_v9 }
 0x20a   : > { %v3033_v10 = vpop.f32.mrf.mxu1 }
 0x20e   : > { %2238 = vmatmul.msk.f32.gmra.mxu2 %vm629_vm1, %v574_v60 }
 0x210   : > { %v763_v12 = vpop.f32.mrf.mxu2 }
 0x211   : > { %v3039_v13 = vadd.f32 %v763_v12, %v593_v11  ;;  %v3147_v11 = vadd.f32 %v3033_v10, %v581_v4  ;;  %v606_v10 = vld [vmem:[%s3986_s3 + $0xc8] sm:$0xff] }
 0x212   : > { %v730_v14 = vpop.f32.mrf.mxu1 }
 0x213   : > { %v860_v15 = vsel %vm823_vm2, %v3039_v13, -inf  ;;  %v3063_v29 = vadd.f32 %v730_v14, %v582_v28  ;;  %v824_v14 = vsel %vm823_vm2, %v3147_v11, -inf }
 0x214   : > { %861 = vmax.xlane.f32.xlu2 %v860_v15 }
 0x215   : > { %v827_v32 = vsel %vm823_vm2, %v3063_v29, -inf }
 0x216   : > { %2239 = vmatmul.msk.f32.gmra.mxu2 %vm629_vm1, %v2979_v48 }
 0x218   : > { %v766_v16 = vpop.f32.mrf.mxu2 }
 0x219   : > { %v3107_v56 = vadd.f32 %v766_v16, %v594_v51  ;;  %v583_v16 = vld [vmem:[%s3986_s3 + $0x10] sm:$0xff] }
 0x21a   : > { %v3045_v18 = vpop.f32.mrf.mxu1 }
 0x21b   : > { %v863_v63 = vsel %vm823_vm2, %v3107_v56, -inf }
 0x21e   : > { %2240 = vmatmul.msk.f32.gmra.mxu2 %vm629_vm1, %v578_v19  ;;  %v599_v19 = vld [vmem:[%s3986_s3 + $0x90] sm:$0xff] }
 0x220   : > { %v769_v20 = vpop.f32.mrf.mxu2 }
 0x221   : > { %v3130_v2 = vadd.f32 %v769_v20, %v595_v0 }
 0x222   : > { %v3048_v21 = vpop.f32.mrf.mxu1 }
 0x223   : > { %v866_v7 = vsel %vm823_vm2, %v3130_v2, -inf }
 0x226   : > { %2241 = vmatmul.msk.f32.gmra.mxu2 %vm629_vm1, %v580_v62 }
 0x228   : > { %v772_v22 = vpop.f32.mrf.mxu2 }
 0x229   : > { %v3132_v3 = vadd.f32 %v772_v22, %v596_v1  ;;  %v3165_v22 = vadd.f32 %v3045_v18, %v583_v16  ;;  %v601_v18 = vld [vmem:[%s3986_s3 + $0xa0] sm:$0xff] }
 0x22a   : > { %v739_v23 = vpop.f32.mrf.mxu1 }
 0x22b   : > { %v3081_v41 = vadd.f32 %v739_v23, %v585_v40  ;;  %v869_v6 = vsel %vm823_vm2, %v3132_v3, -inf  ;;  %v830_v28 = vsel %vm823_vm2, %v3165_v22, -inf  ;;  %v602_v40 = vld [vmem:[%s3986_s3 + $0xa8] sm:$0xff] }
 0x22d   : > { %v836_v44 = vsel %vm823_vm2, %v3081_v41, -inf }
 0x230   : > { %v775_v25 = vpop.f32.mrf.mxu2 }
 0x231   : > { %v3054_v26 = vadd.f32 %v775_v25, %v597_v24 }
 0x233   : > { %v3056_v27 = vpop.f32.mrf.mxu1  ;;  %v872_v17 = vsel %vm823_vm2, %v3054_v26, -inf }
 0x234   : > { %873 = vmax.xlane.f32.xlu2 %v872_v17 }
 0x239   : > { %v778_v30 = vpop.f32.mrf.mxu2 }
 0x23a   : > { %v3149_v12 = vadd.f32 %v778_v30, %v598_v8  ;;  %v584_v30 = vld [vmem:[%s3986_s3 + $0x18] sm:$0xff]  ;;  %v609_v8 = vld [vmem:[%s3986_s3 + $0xe0] sm:$0xff] }
 0x23b   : > { %v3065_v31 = vpop.f32.mrf.mxu1 }
 0x23c   : > { %828 = vmax.xlane.f32.xlu2 %v827_v32  ;;  %v875_v15 = vsel %vm823_vm2, %v3149_v12, -inf }
 0x241   : > { %v781_v33 = vpop.f32.mrf.mxu2 }
 0x242   : > { %v3167_v23 = vadd.f32 %v781_v33, %v599_v19  ;;  %v3184_v33 = vadd.f32 %v3048_v21, %v584_v30  ;;  %v608_v21 = vld [vmem:[%s3986_s3 + $0xd8] sm:$0xff] }
 0x243   : > { %v748_v34 = vpop.f32.mrf.mxu1 }
 0x244   : > { %v3128_v55 = vadd.f32 %v748_v34, %v588_v61  ;;  %v878_v17 = vsel %vm823_vm2, %v3167_v23, -inf  ;;  %v589_v61 = vld [vmem:[%s3986_s3 + $0x40] sm:$0xff] }
 0x246   : > { %v845_v5 = vsel %vm823_vm2, %v3128_v55, -inf }
 0x249   : > { %v784_v36 = vpop.f32.mrf.mxu2 }
 0x24a   : > { %v3072_v37 = vadd.f32 %v784_v36, %v600_v35  ;;  %v833_v35 = vsel %vm823_vm2, %v3184_v33, -inf }
 0x24b   : > { %v3074_v38 = vpop.f32.mrf.mxu1 }
 0x24c   : > { %v881_v39 = vsel %vm823_vm2, %v3072_v37, -inf }
 0x24d   : > { %882 = vmax.xlane.f32.xlu2 %v881_v39  ;;  %v586_v39 = vld [vmem:[%s3986_s3 + $0x28] sm:$0xff] }
 0x251   : > { %v3083_v42 = vpop.f32.mrf.mxu2 }
 0x252   : > { %v3187_v34 = vadd.f32 %v3083_v42, %v601_v18 }
 0x253   : > { %v3085_v43 = vpop.f32.mrf.mxu1 }
 0x254   : > { %v884_v36 = vsel %vm823_vm2, %v3187_v34, -inf }
 0x255   : > { %837 = vmax.xlane.f32.xlu2 %v836_v44  ;;  %v3203_v44 = vadd.f32 %v3056_v27, %v586_v39  ;;  %v587_v27 = vld [vmem:[%s3986_s3 + $0x30] sm:$0xff] }
 0x259   : > { %v3089_v45 = vpop.f32.mrf.mxu2 }
 0x25b   : > { %v757_v48 = vpop.f32.mrf.mxu1 }
 0x25c   : > { %v3094_v49 = vadd.f32 %v757_v48, %v591_v46  ;;  %v3206_v46 = vadd.f32 %v3089_v45, %v602_v40  ;;  %v604_v45 = vld [vmem:[%s3986_s3 + $0xb8] sm:$0xff] }
 0x25e   : > { %v854_v50 = vsel %vm823_vm2, %v3094_v49, -inf  ;;  %v887_v51 = vsel %vm823_vm2, %v3206_v46, -inf }
 0x25f   : > { %855 = vmax.xlane.f32.xlu0 %v854_v50 }
 0x261   : > { %v793_v53 = vpop.f32.mrf.mxu2 }
 0x262   : > { %v3109_v57 = vadd.f32 %v793_v53, %v603_v52  ;;  %v839_v52 = vsel %vm823_vm2, %v3203_v44, -inf  ;;  %v3223_v53 = vadd.f32 %v3065_v31, %v587_v27  ;;  %v3238_v31 = vadd.f32 %v3074_v38, %v589_v61  ;;  %v611_v61 = vld [vmem:[%s3986_s3 + $0xf0] sm:$0xff] }
 0x263   : > { %v760_v58 = vpop.f32.mrf.mxu1 }
 0x264   : > { %v3111_v59 = vadd.f32 %v760_v58, %v592_v54  ;;  %v890_v60 = vsel %vm823_vm2, %v3109_v57, -inf  ;;  %v842_v58 = vsel %vm823_vm2, %v3223_v53, -inf  ;;  %v848_v1 = vsel %vm823_vm2, %v3238_v31, -inf }
 0x265   : > { %891 = vmax.xlane.f32.xlu2 %v890_v60 }
 0x266   : > { %v857_v62 = vsel %vm823_vm2, %v3111_v59, -inf }
 0x267   : > { %858 = vmax.xlane.f32.xlu1 %v857_v62  ;;  %864 = vmax.xlane.f32.xlu0 %v863_v63  ;;  %v590_v62 = vld [vmem:[%s3986_s3 + $0x48] sm:$0xff] }
 0x268   : > { %v3241_v63 = vadd.f32 %v3085_v43, %v590_v62 }
 0x269   : > { %v796_v47 = vpop.f32.mrf.mxu2 }
 0x26a   : > { %v3225_v54 = vadd.f32 %v796_v47, %v604_v45  ;;  %v851_v0 = vsel %vm823_vm2, %v3241_v63, -inf  ;;  %v605_v47 = vld [vmem:[%s3986_s3 + $0xc0] sm:$0xff] }
 0x26c   : > { %v893_v60 = vsel %vm823_vm2, %v3225_v54, -inf }
 0x26d   : > { %846 = vmax.xlane.f32.xlu2 %v845_v5  ;;  %v607_v5 = vld [vmem:[%s3986_s3 + $0xd0] sm:$0xff] }
 0x26f   : > { %870 = vmax.xlane.f32.xlu1 %v869_v6  ;;  %867 = vmax.xlane.f32.xlu0 %v866_v7 }
 0x271   : > { %v799_v9 = vpop.f32.mrf.mxu2 }
 0x272   : > { %v3253_v38 = vadd.f32 %v799_v9, %v605_v47 }
 0x274   : > { %v896_v7 = vsel %vm823_vm2, %v3253_v38, -inf }
 0x277   : > { %825 = vmax.xlane.f32.xlu0 %v824_v14  ;;  %876 = vmax.xlane.f32.xlu1 %v875_v15 }
 0x279   : > { %v802_v20 = vpop.f32.mrf.mxu2 }
 0x27a   : > { %v3169_v24 = vadd.f32 %v802_v20, %v606_v10 }
 0x27c   : > { %v899_v25 = vsel %vm823_vm2, %v3169_v24, -inf }
 0x27d   : > { %900 = vmax.xlane.f32.xlu2 %v899_v25 }
 0x27f   : > { %879 = vmax.xlane.f32.xlu0 %v878_v17  ;;  %831 = vmax.xlane.f32.xlu1 %v830_v28 }
 0x281   : > { %v805_v32 = vpop.f32.mrf.mxu2 }
 0x282   : > { %v3255_v43 = vadd.f32 %v805_v32, %v607_v5 }
 0x284   : > { %v902_v4 = vsel %vm823_vm2, %v3255_v43, -inf }
 0x287   : > { %834 = vmax.xlane.f32.xlu0 %v833_v35  ;;  %885 = vmax.xlane.f32.xlu1 %v884_v36  ;;  %v862_v6 = vpop.xlane.xlu2 %861 }
 0x289   : > { %v808_v42 = vpop.f32.mrf.mxu2 }
 0x28a   : > { %v3208_v48 = vadd.f32 %v808_v42, %v608_v21 }
 0x28c   : > { %v905_v50 = vsel %vm823_vm2, %v3208_v48, -inf }
 0x28d   : > { %906 = vmax.xlane.f32.xlu2 %v905_v50 }
 0x28f   : > { %888 = vmax.xlane.f32.xlu0 %v887_v51  ;;  %840 = vmax.xlane.f32.xlu1 %v839_v52 }
 0x291   : > { %v811_v14 = vpop.f32.mrf.mxu2 }
 0x292   : > { %v3264_v16 = vadd.f32 %v811_v14, %v609_v8 }
 0x294   : > { %v908_v9 = vsel %vm823_vm2, %v3264_v16, -inf }
 0x297   : > { %843 = vmax.xlane.f32.xlu0 %v842_v58  ;;  %894 = vmax.xlane.f32.xlu1 %v893_v60 }
 0x299   : > { %v3280_v21 = vpop.f32.mrf.mxu2 }
 0x29f   : > { %852 = vmax.xlane.f32.xlu0 %v851_v0  ;;  %849 = vmax.xlane.f32.xlu1 %v848_v1 }
 0x2a1   : > { %v817_v62 = vpop.f32.mrf.mxu2 }
 0x2a7   : > { %897 = vmax.xlane.f32.xlu0 %v896_v7  ;;  %903 = vmax.xlane.f32.xlu1 %v902_v4  ;;  %v874_v15 = vpop.xlane.xlu2 %873 }
 0x2a8   : > { %v936_v7 = vsub.f32 %v3054_v26, %v874_v15 }
 0x2aa   : > { %v984_v14 = vmul.f32 1.442695, %v936_v7 }
 0x2af   : > { %909 = vmax.xlane.f32.xlu0 %v908_v9  ;;  %v829_v19 = vpop.xlane.xlu2 %828 }
 0x2b0   : > { %v921_v10 = vsub.f32 %v3063_v29, %v829_v19 }
 0x2b2   : > { %v954_v20 = vmul.f32 1.442695, %v921_v10 }
 0x2b4   : > { %2398 = vpow2.f32 %v954_v20 }
 0x2ba   : > { %v3269_v25 = vpop.eup %2398 }
 0x2bb   : > { %v1019_v17 = vsel %vm823_vm2, %v3269_v25, 0.0 }
 0x2bc   : > { %1020 = vadd.xlane.f32.xlu2 %v1019_v17 }
 0x2c0   : > { %v3274_v32 = vpop.xlane.xlu2 %882 }
 0x2c8   : > { %v838_v27 = vpop.xlane.xlu2 %837 }
 0x2d2   : > { %v856_v28 = vpop.xlane.xlu0 %855 }
 0x2d3   : > { %v930_v30 = vsub.f32 %v3094_v49, %v856_v28  ;;  %v932_v49 = vsub.f32 %v3039_v13, %v862_v6  ;;  %v3294_v13 = vadd.f32 %v817_v62, %v611_v61 }
 0x2d5   : > { %v972_v18 = vmul.f32 1.442695, %v930_v30  ;;  %v976_v45 = vmul.f32 1.442695, %v932_v49  ;;  %v914_v4 = vsel %vm823_vm2, %v3294_v13, -inf }
 0x2d7   : > { %2400 = vpow2.f32 %v972_v18 }
 0x2da   : > { %v865_v35 = vpop.xlane.xlu0 %864  ;;  %v859_v36 = vpop.xlane.xlu1 %858 }
 0x2db   : > { %v933_v39 = vsub.f32 %v3107_v56, %v865_v35  ;;  %v931_v29 = vsub.f32 %v3111_v59, %v859_v36  ;;  %v924_v59 = vsub.f32 %v3081_v41, %v838_v27 }
 0x2dd   : > { %v3278_v40 = vpop.eup %2400  ;;  %v978_v42 = vmul.f32 1.442695, %v933_v39  ;;  %v974_v50 = vmul.f32 1.442695, %v931_v29  ;;  %v960_v0 = vmul.f32 1.442695, %v924_v59  ;;  %v939_v59 = vsub.f32 %v3072_v37, %v3274_v32  ;;  %v820_v32 = vpop.f32.mrf.mxu2 }
 0x2de   : > { %2252 = vmatmul.msk.f32.vlgmr.msra.gmra.mxu3 %vm823_vm2, %v3278_v40  ;;  %v612_v37 = vld [vmem:[%s3986_s3 + $0xf8] sm:$0xff] }
 0x2df   : > { %2402 = vpow2.f32 %v978_v42  ;;  %v3340_v7 = vadd.f32 %v820_v32, %v612_v37 }
 0x2e0   : > { %2404 = vpow2.f32 %v974_v50 }
 0x2e1   : > { %2406 = vpow2.f32 %v976_v45 }
 0x2e2   : > { %v868_v51 = vpop.xlane.xlu0 %867  ;;  %v871_v52 = vpop.xlane.xlu1 %870  ;;  %2408 = vpow2.f32 %v960_v0 }
 0x2e3   : > { %v934_v8 = vsub.f32 %v3130_v2, %v868_v51  ;;  %v3332_v0 = vpop.xlane.xlu2 %891 }
 0x2e5   : > { %v2403_v56 = vpop.eup %2402  ;;  %v980_v10 = vmul.f32 1.442695, %v934_v8 }
 0x2e6   : > { %v3285_v58 = vpop.eup %2404  ;;  %v1055_v60 = vsel %vm823_vm2, %v2403_v56, 0.0 }
 0x2e7   : > { %2253 = vmatmul.msk.f32.gmra.mxu3 %vm823_vm2, %v3285_v58  ;;  %1056 = vadd.xlane.f32.xlu2 %v1055_v60  ;;  %v2407_v6 = vpop.eup %2406 }
 0x2e8   : > { %v3303_v20 = vpop.eup %2408  ;;  %v1052_v49 = vsel %vm823_vm2, %v2407_v6, 0.0 }
 0x2e9   : > { %v1028_v28 = vsel %vm823_vm2, %v3303_v20, 0.0 }
 0x2ea   : > { %v826_v1 = vpop.xlane.xlu0 %825  ;;  %v877_v47 = vpop.xlane.xlu1 %876 }
 0x2eb   : > { %v920_v5 = vsub.f32 %v3147_v11, %v826_v1  ;;  %v937_v15 = vsub.f32 %v3149_v12, %v877_v47 }
 0x2ed   : > { %v952_v41 = vmul.f32 1.442695, %v920_v5  ;;  %v986_v30 = vmul.f32 1.442695, %v937_v15 }
 0x2ef   : > { %2410 = vpow2.f32 %v952_v41  ;;  %2254 = vmatmul.msk.f32.gmra.mxu3 %vm823_vm2, %v2407_v6  ;;  %915 = vmax.xlane.f32.xlu2 %v914_v4 }
 0x2f0   : > { %2412 = vpow2.f32 %v984_v14 }
 0x2f1   : > { %2414 = vpow2.f32 %v980_v10  ;;  %v917_v10 = vsel %vm823_vm2, %v3340_v7, -inf }
 0x2f2   : > { %v880_v9 = vpop.xlane.xlu0 %879  ;;  %v832_v19 = vpop.xlane.xlu1 %831 }
 0x2f3   : > { %v922_v11 = vsub.f32 %v3165_v22, %v832_v19  ;;  %v935_v22 = vsub.f32 %v3132_v3, %v871_v52  ;;  %v938_v50 = vsub.f32 %v3167_v23, %v880_v9  ;;  %v610_v3 = vld [vmem:[%s3986_s3 + $0xe8] sm:$0xff] }
 0x2f4   : > { %v3324_v52 = vadd.f32 %v3280_v21, %v610_v3 }
 0x2f5   : > { %v2411_v17 = vpop.eup %2410  ;;  %v956_v26 = vmul.f32 1.442695, %v922_v11  ;;  %v982_v12 = vmul.f32 1.442695, %v935_v22  ;;  %v847_v11 = vpop.xlane.xlu2 %846 }
 0x2f6   : > { %2242 = vmatmul.msk.f32.vlgmr.msrb.gmra.mxu0 %vm823_vm2, %v2411_v17  ;;  %v1016_v2 = vsel %vm823_vm2, %v2411_v17, 0.0  ;;  %v2413_v36 = vpop.eup %2412  ;;  %v911_v62 = vsel %vm823_vm2, %v3324_v52, -inf }
 0x2f7   : > { %2255 = vmatmul.msk.f32.gmra.mxu3 %vm823_vm2, %v2403_v56  ;;  %1017 = vadd.xlane.f32.xlu1 %v1016_v2  ;;  %2416 = vpow2.f32 %v956_v26  ;;  %v2415_v39 = vpop.eup %2414  ;;  %v1064_v51 = vsel %vm823_vm2, %v2413_v36, 0.0 }
 0x2f8   : > { %1029 = vadd.xlane.f32.xlu2 %v1028_v28  ;;  %2418 = vpow2.f32 %v986_v30  ;;  %v1058_v1 = vsel %vm823_vm2, %v2415_v39, 0.0 }
 0x2f9   : > { %2420 = vpow2.f32 %v982_v12 }
 0x2fa   : > { %v835_v18 = vpop.xlane.xlu0 %834  ;;  %v886_v35 = vpop.xlane.xlu1 %885 }
 0x2fb   : > { %v923_v29 = vsub.f32 %v3184_v33, %v835_v18  ;;  %v940_v8 = vsub.f32 %v3187_v34, %v886_v35 }
 0x2fd   : > { %v2417_v42 = vpop.eup %2416  ;;  %v958_v23 = vmul.f32 1.442695, %v923_v29  ;;  %v992_v17 = vmul.f32 1.442695, %v940_v8 }
 0x2fe   : > { %2243 = vmatmul.msk.f32.gmra.mxu0 %vm823_vm2, %v3269_v25  ;;  %v1022_v33 = vsel %vm823_vm2, %v2417_v42, 0.0  ;;  %v988_v25 = vmul.f32 1.442695, %v938_v50  ;;  %v2419_v56 = vpop.eup %2418 }
 0x2ff   : > { %2256 = vmatmul.msk.f32.gmra.mxu3 %vm823_vm2, %v2415_v39  ;;  %1053 = vadd.xlane.f32.xlu1 %v1052_v49  ;;  %2422 = vpow2.f32 %v958_v23  ;;  %v2421_v60 = vpop.eup %2420  ;;  %v1067_v21 = vsel %vm823_vm2, %v2419_v56, 0.0 }
 0x300   : > { %1065 = vadd.xlane.f32.xlu2 %v1064_v51  ;;  %1023 = vadd.xlane.f32.xlu0 %v1022_v33  ;;  %2424 = vpow2.f32 %v988_v25  ;;  %v927_v33 = vsub.f32 %v3128_v55, %v847_v11 }
 0x302   : > { %v889_v27 = vpop.xlane.xlu0 %888  ;;  %v841_v45 = vpop.xlane.xlu1 %840 }
 0x303   : > { %v941_v61 = vsub.f32 %v3206_v46, %v889_v27  ;;  %v990_v46 = vmul.f32 1.442695, %v939_v59  ;;  %v925_v9 = vsub.f32 %v3203_v44, %v841_v45 }
 0x305   : > { %v994_v47 = vmul.f32 1.442695, %v941_v61  ;;  %v2423_v6 = vpop.eup %2422  ;;  %2426 = vpow2.f32 %v990_v46  ;;  %v962_v2 = vmul.f32 1.442695, %v925_v9  ;;  %v942_v61 = vsub.f32 %v3109_v57, %v3332_v0 }
 0x306   : > { %2244 = vmatmul.msk.f32.gmra.mxu0 %vm823_vm2, %v2417_v42  ;;  %v2425_v4 = vpop.eup %2424  ;;  %v1025_v14 = vsel %vm823_vm2, %v2423_v6, 0.0 }
 0x307   : > { %2257 = vmatmul.msk.f32.gmra.mxu3 %vm823_vm2, %v2421_v60  ;;  %912 = vmax.xlane.f32.xlu1 %v911_v62  ;;  %2428 = vpow2.f32 %v994_v47  ;;  %v1070_v19 = vsel %vm823_vm2, %v2425_v4, 0.0 }
 0x308   : > { %1068 = vadd.xlane.f32.xlu2 %v1067_v21  ;;  %1059 = vadd.xlane.f32.xlu0 %v1058_v1  ;;  %2430 = vpow2.f32 %v992_v17 }
 0x309   : > { %2432 = vpow2.f32 %v962_v2 }
 0x30a   : > { %v844_v5 = vpop.xlane.xlu0 %843  ;;  %v895_v41 = vpop.xlane.xlu1 %894 }
 0x30b   : > { %v2427_v15 = vpop.eup %2426  ;;  %v926_v44 = vsub.f32 %v3223_v53, %v844_v5  ;;  %v943_v30 = vsub.f32 %v3225_v54, %v895_v41  ;;  %v1046_v5 = vsel %vm823_vm2, %v3278_v40, 0.0 }
 0x30d   : > { %v3351_v22 = vpop.eup %2428  ;;  %v964_v12 = vmul.f32 1.442695, %v926_v44  ;;  %v998_v54 = vmul.f32 1.442695, %v943_v30 }
 0x30e   : > { %2245 = vmatmul.msk.f32.gmra.mxu0 %vm823_vm2, %v2423_v6  ;;  %v1079_v53 = vsel %vm823_vm2, %v3351_v22, 0.0  ;;  %v2431_v42 = vpop.eup %2430 }
 0x30f   : > { %2258 = vmatmul.msk.f32.gmra.mxu3 %vm823_vm2, %v2413_v36  ;;  %1026 = vadd.xlane.f32.xlu1 %v1025_v14  ;;  %v1061_v36 = vsel %vm823_vm2, %v2421_v60, 0.0  ;;  %v3364_v50 = vpop.eup %2432 }
 0x310   : > { %1071 = vadd.xlane.f32.xlu2 %v1070_v19  ;;  %918 = vmax.xlane.f32.xlu0 %v917_v10 }
 0x312   : > { %v853_v34 = vpop.xlane.xlu0 %852  ;;  %v850_v26 = vpop.xlane.xlu1 %849 }
 0x313   : > { %v928_v28 = vsub.f32 %v3238_v31, %v850_v26  ;;  %v929_v35 = vsub.f32 %v3241_v63, %v853_v34  ;;  %v1073_v31 = vsel %vm823_vm2, %v2427_v15, 0.0  ;;  %v901_v63 = vpop.xlane.xlu2 %900 }
 0x314   : > { %v945_v49 = vsub.f32 %v3169_v24, %v901_v63 }
 0x315   : > { %v968_v18 = vmul.f32 1.442695, %v928_v28  ;;  %v970_v39 = vmul.f32 1.442695, %v929_v35 }
 0x316   : > { %2246 = vmatmul.msk.f32.gmra.mxu0 %vm823_vm2, %v3303_v20  ;;  %v1002_v25 = vmul.f32 1.442695, %v945_v49 }
 0x317   : > { %2259 = vmatmul.msk.f32.gmra.mxu3 %vm823_vm2, %v2419_v56  ;;  %1062 = vadd.xlane.f32.xlu1 %v1061_v36  ;;  %2434 = vpow2.f32 %v968_v18  ;;  %v966_v56 = vmul.f32 1.442695, %v927_v33 }
 0x318   : > { %1074 = vadd.xlane.f32.xlu2 %v1073_v31  ;;  %1080 = vadd.xlane.f32.xlu0 %v1079_v53  ;;  %2436 = vpow2.f32 %v964_v12 }
 0x319   : > { %2438 = vpow2.f32 %v998_v54 }
 0x31a   : > { %v898_v29 = vpop.xlane.xlu0 %897  ;;  %2440 = vpow2.f32 %v970_v39  ;;  %v904_v27 = vpop.xlane.xlu1 %903 }
 0x31b   : > { %v944_v20 = vsub.f32 %v3253_v38, %v898_v29  ;;  %v1076_v38 = vsel %vm823_vm2, %v2431_v42, 0.0  ;;  %v946_v55 = vsub.f32 %v3255_v43, %v904_v27  ;;  %v996_v43 = vmul.f32 1.442695, %v942_v61  ;;  %v907_v32 = vpop.xlane.xlu2 %906 }
 0x31c   : > { %v947_v0 = vsub.f32 %v3208_v48, %v907_v32 }
 0x31d   : > { %v1000_v3 = vmul.f32 1.442695, %v944_v20  ;;  %v2435_v51 = vpop.eup %2434  ;;  %v1004_v37 = vmul.f32 1.442695, %v946_v55 }
 0x31e   : > { %2247 = vmatmul.msk.f32.gmra.mxu0 %vm823_vm2, %v3364_v50  ;;  %v1040_v23 = vsel %vm823_vm2, %v2435_v51, 0.0  ;;  %v3373_v24 = vpop.eup %2436  ;;  %v1006_v41 = vmul.f32 1.442695, %v947_v0 }
 0x31f   : > { %2442 = vpow2.f32 %v1000_v3  ;;  %2260 = vmatmul.msk.f32.gmra.mxu3 %vm823_vm2, %v2425_v4  ;;  %1041 = vadd.xlane.f32.xlu1 %v1040_v23  ;;  %v2439_v45 = vpop.eup %2438 }
 0x320   : > { %1077 = vadd.xlane.f32.xlu2 %v1076_v38  ;;  %v2441_v59 = vpop.eup %2440  ;;  %2444 = vpow2.f32 %v1002_v25  ;;  %v1085_v21 = vsel %vm823_vm2, %v2439_v45, 0.0 }
 0x321   : > { %2446 = vpow2.f32 %v966_v56  ;;  %v1043_v1 = vsel %vm823_vm2, %v2441_v59, 0.0 }
 0x322   : > { %2448 = vpow2.f32 %v1004_v37  ;;  %v910_v6 = vpop.xlane.xlu0 %909 }
 0x323   : > { %2450 = vpow2.f32 %v996_v43  ;;  %v948_v48 = vsub.f32 %v3264_v16, %v910_v6  ;;  %v1049_v16 = vsel %vm823_vm2, %v3285_v58, 0.0 }
 0x324   : > { %2452 = vpow2.f32 %v1006_v41 }
 0x325   : > { %v2443_v60 = vpop.eup %2442  ;;  %v1008_v40 = vmul.f32 1.442695, %v948_v48 }
 0x326   : > { %2248 = vmatmul.msk.f32.gmra.mxu0 %vm823_vm2, %v3373_v24  ;;  %v1088_v62 = vsel %vm823_vm2, %v2443_v60, 0.0  ;;  %v2445_v46 = vpop.eup %2444 }
 0x327   : > { %2261 = vmatmul.msk.f32.gmra.mxu3 %vm823_vm2, %v2427_v15  ;;  %1089 = vadd.xlane.f32.xlu0 %v1088_v62  ;;  %v3384_v57 = vpop.eup %2446  ;;  %v1091_v47 = vsel %vm823_vm2, %v2445_v46, 0.0  ;;  %2454 = vpow2.f32 %v1008_v40 }
 0x328   : > { %1086 = vadd.xlane.f32.xlu2 %v1085_v21  ;;  %1044 = vadd.xlane.f32.xlu1 %v1043_v1  ;;  %v2449_v4 = vpop.eup %2448 }
 0x329   : > { %v2451_v8 = vpop.eup %2450  ;;  %v1094_v14 = vsel %vm823_vm2, %v2449_v4, 0.0 }
 0x32a   : > { %v1082_v9 = vsel %vm823_vm2, %v2451_v8, 0.0  ;;  %v2453_v19 = vpop.eup %2452 }
 0x32b   : > { %v1097_v10 = vsel %vm823_vm2, %v2453_v19, 0.0 }
 0x32d   : > { %v2455_v11 = vpop.eup %2454 }
 0x32e   : > { %2249 = vmatmul.msk.f32.gmra.mxu0 %vm823_vm2, %v3384_v57  ;;  %v1100_v17 = vsel %vm823_vm2, %v2455_v11, 0.0 }
 0x32f   : > { %2262 = vmatmul.msk.f32.gmra.mxu3 %vm823_vm2, %v2431_v42  ;;  %1092 = vadd.xlane.f32.xlu0 %v1091_v47  ;;  %v3407_v34 = vpop.xlane.xlu2 %1020 }
 0x330   : > { %1047 = vadd.xlane.f32.xlu1 %v1046_v5  ;;  %v1371_v38 = vand.u32 2147483648, %v3407_v34  ;;  %vm1365_vm8 = vweird.f32 %v3407_v34  ;;  %v1369_v21 = vand.u32 2147483647, %v3407_v34 }
 0x332   : > { %v1372_v6 = vor.u32 1.1754944e-38, %v1371_v38  ;;  %vm1370_vm14 = vcmp.eq.f32.partialorder %v1369_v21, 8.507059e+37 }
 0x336   : > { %2250 = vmatmul.msk.f32.gmra.mxu0 %vm823_vm2, %v2435_v51 }
 0x337   : > { %2263 = vmatmul.msk.f32.gmra.mxu3 %vm823_vm2, %v3351_v22  ;;  %1095 = vadd.xlane.f32.xlu0 %v1094_v14 }
 0x338   : > { %1083 = vadd.xlane.f32.xlu1 %v1082_v9 }
 0x33e   : > { %2251 = vmatmul.msk.f32.gmra.mxu0 %vm823_vm2, %v2441_v59 }
 0x33f   : > { %2264 = vmatmul.msk.f32.gmra.mxu3 %vm823_vm2, %v2451_v8  ;;  %1098 = vadd.xlane.f32.xlu0 %v1097_v10 }
 0x340   : > { %1050 = vadd.xlane.f32.xlu1 %v1049_v16 }
 0x347   : > { %2265 = vmatmul.msk.f32.gmra.mxu3 %vm823_vm2, %v2439_v45  ;;  %1101 = vadd.xlane.f32.xlu0 %v1100_v17 }
 0x34f   : > { %2266 = vmatmul.msk.f32.gmra.mxu3 %vm823_vm2, %v2443_v60 }
 0x357   : > { %2267 = vmatmul.msk.f32.gmra.mxu3 %vm823_vm2, %v2445_v46 }
 0x35a   : > { %v1057_v26 = vpop.xlane.xlu2 %1056 }
 0x35b   : > { %2456 = vrcp.f32 %v1057_v26  ;;  %v1551_v27 = vand.u32 2147483648, %v1057_v26  ;;  %vm1545_vm5 = vweird.f32 %v1057_v26  ;;  %v1549_v59 = vand.u32 2147483647, %v1057_v26 }
 0x35c   : > { %2458 = vrcp.f32 %v3407_v34 }
 0x35d   : > { %v1552_v37 = vor.u32 1.1754944e-38, %v1551_v27  ;;  %vm1550_vm12 = vcmp.eq.f32.partialorder %v1549_v59, 8.507059e+37 }
 0x35f   : > { %2268 = vmatmul.msk.f32.gmra.mxu3 %vm823_vm2, %v2449_v4 }
 0x361   : > { %v3412_v58 = vpop.f32.mrf.mxu3  ;;  %v2457_v28 = vpop.eup %2456 }
 0x362   : > { %v916_v15 = vpop.xlane.xlu2 %915  ;;  %v3415_v22 = vpop.eup %2458  ;;  %v1541_v30 = vmul.f32 %v2457_v28, %v1057_v26  ;;  %vm1546_vm3 = vweird.f32 %v2457_v28 }
 0x363   : > { %v950_v2 = vsub.f32 %v3294_v13, %v916_v15  ;;  %v1361_v18 = vmul.f32 %v3415_v22, %v3407_v34  ;;  %vm1366_vm4 = vweird.f32 %v3415_v22  ;;  %vm3444_vm7 = vmor %vm1545_vm5, %vm1546_vm3 }
 0x364   : > { %v1542_v31 = vsub.f32 1.0, %v1541_v30  ;;  %vm3455_vm10 = vmor %vm1365_vm8, %vm1366_vm4 }
 0x365   : > { %v1012_v44 = vmul.f32 1.442695, %v950_v2  ;;  %v1362_v12 = vsub.f32 1.0, %v1361_v18 }
 0x366   : > { %v1543_v63 = vmul.f32 %v2457_v28, %v1542_v31 }
 0x367   : > { %2460 = vpow2.f32 %v1012_v44  ;;  %2269 = vmatmul.msk.f32.gmra.mxu3 %vm823_vm2, %v2453_v19  ;;  %v1363_v39 = vmul.f32 %v3415_v22, %v1362_v12 }
 0x368   : > { %v1544_v33 = vadd.f32 %v2457_v28, %v1543_v63 }
 0x369   : > { %v1364_v45 = vadd.f32 %v3415_v22, %v1363_v39 }
 0x36a   : > { %v3420_v35 = vpop.f32.mrf.mxu3  ;;  %v1018_v36 = vpop.xlane.xlu1 %1017  ;;  %v1548_v62 = vsel %vm3444_vm7, %v2457_v28, %v1544_v33 }
 0x36b   : > { %v3422_v53 = vpop.xlane.xlu2 %1029  ;;  %2462 = vrcp.f32 %v1018_v36  ;;  %v1356_v56 = vand.u32 2147483648, %v1018_v36  ;;  %v1354_v55 = vand.u32 2147483647, %v1018_v36  ;;  %vm1350_vm9 = vweird.f32 %v1018_v36 }
 0x36c   : > { %v1368_v46 = vsel %vm3455_vm10, %v3415_v22, %v1364_v45  ;;  %v1553_v5 = vsel %vm1550_vm12, %v1552_v37, %v1548_v62  ;;  %v1414_v43 = vand.u32 2147483647, %v3422_v53 }
 0x36d   : > { %v3424_v13 = vpop.eup %2460  ;;  %v1357_v32 = vor.u32 1.1754944e-38, %v1356_v56  ;;  %vm1355_vm13 = vcmp.eq.f32.partialorder %v1354_v55, 8.507059e+37  ;;  %v1373_v17 = vsel %vm1370_vm14, %v1372_v6, %v1368_v46 }
 0x36e   : > { %v1106_v54 = vsel %vm823_vm2, %v3424_v13, 0.0 }
 0x36f   : > { %2270 = vmatmul.msk.f32.gmra.mxu3 %vm823_vm2, %v2455_v11  ;;  %1107 = vadd.xlane.f32.xlu2 %v1106_v54 }
 0x371   : > { %v2463_v29 = vpop.eup %2462 }
 0x372   : > { %v1346_v20 = vmul.f32 %v2463_v29, %v1018_v36  ;;  %v3430_v42 = vpop.f32.mrf.mxu3  ;;  %v3432_v49 = vpop.xlane.xlu1 %1053  ;;  %vm1351_vm6 = vweird.f32 %v2463_v29 }
 0x373   : > { %v3434_v3 = vpop.xlane.xlu2 %1065  ;;  %v3436_v51 = vpop.xlane.xlu0 %1023  ;;  %vm1352_vm11 = vmor %vm1350_vm9, %vm1351_vm6 }
 0x374   : > { %v1347_v23 = vsub.f32 1.0, %v1346_v20  ;;  %v1249_v25 = vpop.f32.mrf.mxu0  ;;  %2464 = vrcp.f32 %v3436_v51  ;;  %v1386_v22 = vand.u32 2147483648, %v3436_v51  ;;  %v1384_v30 = vand.u32 2147483647, %v3436_v51 }
 0x375   : > { %2466 = vrcp.f32 %v3434_v3  ;;  %vm1380_vm3 = vweird.f32 %v3436_v51  ;;  %vm1590_vm7 = vweird.f32 %v3434_v3 }
 0x376   : > { %v1348_v60 = vmul.f32 %v2463_v29, %v1347_v23  ;;  %2468 = vrcp.f32 %v3422_v53  ;;  %v1387_v38 = vor.u32 1.1754944e-38, %v1386_v22  ;;  %vm1385_vm5 = vcmp.eq.f32.partialorder %v1384_v30, 8.507059e+37 }
 0x377   : > { %v1534_v30 = vand.u32 2147483647, %v3432_v49 }
 0x378   : > { %v1349_v1 = vadd.f32 %v2463_v29, %v1348_v60 }
 0x37a   : > { %v1353_v0 = vsel %vm1352_vm11, %v2463_v29, %v1349_v1  ;;  %v1288_v47 = vpop.f32.mrf.mxu3  ;;  %v913_v41 = vpop.xlane.xlu1 %912 }
 0x37b   : > { %v2465_v4 = vpop.eup %2464  ;;  %v1358_v8 = vsel %vm1355_vm13, %v1357_v32, %v1353_v0  ;;  %v3462_v48 = vmul.f32 %v1553_v5, %v1288_v47  ;;  %v3464_v14 = vpop.xlane.xlu2 %1068  ;;  %v949_v40 = vsub.f32 %v3324_v52, %v913_v41  ;;  %v1416_v32 = vand.u32 2147483648, %v3422_v53 }
 0x37c   : > { %v3466_v9 = vpop.xlane.xlu0 %1059  ;;  %v3469_v19 = vpop.eup %2466  ;;  %v1376_v10 = vmul.f32 %v2465_v4, %v3436_v51  ;;  %v3472_v16 = vmul.f32 %v1358_v8, %v1249_v25  ;;  %vm1381_vm15 = vweird.f32 %v2465_v4  ;;  %v1594_v41 = vand.u32 2147483647, %v3434_v3 }
 0x37d   : > { %v1252_v11 = vpop.f32.mrf.mxu0  ;;  %2470 = vrcp.f32 %v3466_v9  ;;  %v1010_v34 = vmul.f32 1.442695, %v949_v40  ;;  %v3477_v15 = vpop.eup %2468  ;;  %v1586_v52 = vmul.f32 %v3469_v19, %v3434_v3  ;;  %vm1382_vm4 = vmor %vm1380_vm3, %vm1381_vm15  ;;  %v1566_v55 = vand.u32 2147483648, %v3466_v9 }
 0x37e   : > { %v3475_v26 = vmul.f32 %v1373_v17, %v1252_v11  ;;  %v1377_v2 = vsub.f32 1.0, %v1376_v10  ;;  %2472 = vrcp.f32 %v3464_v14  ;;  %v1406_v44 = vmul.f32 %v3477_v15, %v3422_v53 }
 0x37f   : > { %2474 = vpow2.f32 %v1010_v34  ;;  %v1587_v54 = vsub.f32 1.0, %v1586_v52  ;;  %v1564_v21 = vand.u32 2147483647, %v3466_v9  ;;  %vm1560_vm8 = vweird.f32 %v3466_v9 }
 0x380   : > { %v1378_v28 = vmul.f32 %v2465_v4, %v1377_v2  ;;  %v1407_v25 = vsub.f32 1.0, %v1406_v44  ;;  %vm1591_vm10 = vweird.f32 %v3469_v19  ;;  %v1596_v11 = vand.u32 2147483648, %v3434_v3 }
 0x381   : > { %v1588_v61 = vmul.f32 %v3469_v19, %v1587_v54  ;;  %vm1565_vm11 = vcmp.eq.f32.partialorder %v1564_v21, 8.507059e+37  ;;  %vm1411_vm12 = vweird.f32 %v3477_v15  ;;  %vm3530_vm14 = vmor %vm1590_vm7, %vm1591_vm10  ;;  %vm1410_vm15 = vweird.f32 %v3422_v53 }
 0x382   : > { %v1291_v18 = vpop.f32.mrf.mxu3  ;;  %v3486_v36 = vpop.xlane.xlu1 %1026  ;;  %v1379_v31 = vadd.f32 %v2465_v4, %v1378_v28  ;;  %v1408_v37 = vmul.f32 %v3477_v15, %v1407_v25  ;;  %vm1595_vm7 = vcmp.eq.f32.partialorder %v1594_v41, 8.507059e+37  ;;  %vm1605_vm10 = vweird.f32 %v3464_v14 }
 0x383   : > { %v2471_v12 = vpop.eup %2470  ;;  %2476 = vrcp.f32 %v3486_v36  ;;  %v1589_v8 = vadd.f32 %v3469_v19, %v1588_v61  ;;  %v1401_v34 = vand.u32 2147483648, %v3486_v36  ;;  %v1399_v44 = vand.u32 2147483647, %v3486_v36 }
 0x384   : > { %v919_v63 = vpop.xlane.xlu0 %918  ;;  %v3490_v39 = vpop.eup %2472  ;;  %v1556_v29 = vmul.f32 %v2471_v12, %v3466_v9  ;;  %v1383_v27 = vsel %vm1382_vm4, %v2465_v4, %v1379_v31  ;;  %vm1561_vm6 = vweird.f32 %v2471_v12  ;;  %v1567_v4 = vor.u32 1.1754944e-38, %v1566_v55  ;;  %vm3543_vm4 = vmor %vm1410_vm15, %vm1411_vm12 }
 0x385   : > { %v951_v20 = vsub.f32 %v3340_v7, %v919_v63  ;;  %v1255_v33 = vpop.f32.mrf.mxu0  ;;  %v2475_v23 = vpop.eup %2474  ;;  %v1388_v59 = vsel %vm1385_vm5, %v1387_v38, %v1383_v27  ;;  %v1601_v60 = vmul.f32 %v3490_v39, %v3464_v14  ;;  %vm1562_vm9 = vmor %vm1560_vm8, %vm1561_vm6  ;;  %v1409_v2 = vadd.f32 %v3477_v15, %v1408_v37 }
 0x386   : > { %v1557_v45 = vsub.f32 1.0, %v1556_v29  ;;  %2271 = vmatmul.msk.f32.gmra.mxu3 %vm823_vm2, %v2475_v23  ;;  %v1103_v51 = vsel %vm823_vm2, %v2475_v23, 0.0  ;;  %v3499_v7 = vmul.f32 %v1388_v59, %v1255_v33  ;;  %vm1395_vm3 = vweird.f32 %v3486_v36 }
 0x387   : > { %v1014_v56 = vmul.f32 1.442695, %v951_v20  ;;  %1104 = vadd.xlane.f32.xlu1 %v1103_v51  ;;  %v1602_v6 = vsub.f32 1.0, %v1601_v60  ;;  %vm3547_vm5 = vcmp.eq.f32.partialorder %v1414_v43, 8.507059e+37  ;;  %v1413_v53 = vsel %vm3543_vm4, %v3477_v15, %v1409_v2 }
 0x388   : > { %v1558_v62 = vmul.f32 %v2471_v12, %v1557_v45  ;;  %vm1400_vm8 = vcmp.eq.f32.partialorder %v1399_v44, 8.507059e+37  ;;  %v1611_v59 = vand.u32 2147483648, %v3464_v14  ;;  %v1609_v60 = vand.u32 2147483647, %v3464_v14 }
 0x389   : > { %2478 = vpow2.f32 %v1014_v56  ;;  %v2477_v1 = vpop.eup %2476  ;;  %v1536_v2 = vand.u32 2147483648, %v3432_v49  ;;  %vm1535_vm4 = vcmp.eq.f32.partialorder %v1534_v30, 8.507059e+37 }
 0x38a   : > { %v1559_v46 = vadd.f32 %v2471_v12, %v1558_v62  ;;  %v1391_v0 = vmul.f32 %v2477_v1, %v3486_v36  ;;  %v3509_v47 = vpop.f32.mrf.mxu3  ;;  %v3511_v5 = vpop.xlane.xlu1 %1062  ;;  %vm1396_vm13 = vweird.f32 %v2477_v1  ;;  %v1417_v36 = vor.u32 1.1754944e-38, %v1416_v32 }
 0x38b   : > { %vm1397_vm6 = vmor %vm1395_vm3, %vm1396_vm13  ;;  %2480 = vrcp.f32 %v3432_v49  ;;  %v1612_v62 = vor.u32 1.1754944e-38, %v1611_v59  ;;  %vm1610_vm12 = vcmp.eq.f32.partialorder %v1609_v60, 8.507059e+37  ;;  %v1537_v3 = vor.u32 1.1754944e-38, %v1536_v2 }
 0x38c   : > { %v1563_v40 = vsel %vm1562_vm9, %v2471_v12, %v1559_v46  ;;  %v1392_v10 = vsub.f32 1.0, %v1391_v0  ;;  %v1603_v12 = vmul.f32 %v3490_v39, %v1602_v6  ;;  %vm1606_vm9 = vweird.f32 %v3490_v39 }
 0x38d   : > { %v1258_v9 = vpop.f32.mrf.mxu0  ;;  %v1568_v17 = vsel %vm1565_vm11, %v1567_v4, %v1563_v40  ;;  %v1418_v15 = vsel %vm3547_vm5, %v1417_v36, %v1413_v53  ;;  %vm1607_vm11 = vmor %vm1605_vm10, %vm1606_vm9 }
 0x38e   : > { %v3521_v28 = vmul.f32 %v1568_v17, %v1291_v18  ;;  %v1393_v22 = vmul.f32 %v2477_v1, %v1392_v10  ;;  %2272 = vmatmul.msk.f32.gmra.mxu3 %vm823_vm2, %v3424_v13  ;;  %v1593_v18 = vsel %vm3530_vm14, %v3469_v19, %v1589_v8  ;;  %v1597_v13 = vor.u32 1.1754944e-38, %v1596_v11 }
 0x38f   : > { %v2479_v52 = vpop.eup %2478  ;;  %v1402_v19 = vor.u32 1.1754944e-38, %v1401_v34  ;;  %v1604_v27 = vadd.f32 %v3490_v39, %v1603_v12  ;;  %vm1530_vm14 = vweird.f32 %v3432_v49 }
 0x390   : > { %v1109_v31 = vsel %vm823_vm2, %v2479_v52, 0.0  ;;  %v1394_v54 = vadd.f32 %v2477_v1, %v1393_v22  ;;  %v1598_v33 = vsel %vm1595_vm7, %v1597_v13, %v1593_v18 }
 0x391   : > { %1110 = vadd.xlane.f32.xlu0 %v1109_v31  ;;  %v1608_v55 = vsel %vm1607_vm11, %v3490_v39, %v1604_v27  ;;  %v2481_v61 = vpop.eup %2480 }
 0x392   : > { %v1398_v29 = vsel %vm1397_vm6, %v2477_v1, %v1394_v54  ;;  %v1297_v20 = vpop.f32.mrf.mxu3  ;;  %v3555_v25 = vpop.xlane.xlu1 %1041  ;;  %v1613_v1 = vsel %vm1610_vm12, %v1612_v62, %v1608_v55  ;;  %v1526_v37 = vmul.f32 %v2481_v61, %v3432_v49  ;;  %vm1531_vm13 = vweird.f32 %v2481_v61 }
 0x393   : > { %v1403_v38 = vsel %vm1400_vm8, %v1402_v19, %v1398_v29  ;;  %v1599_v23 = vmul.f32 %v1598_v33, %v1297_v20  ;;  %2482 = vrcp.f32 %v3555_v25  ;;  %vm1532_vm15 = vmor %vm1530_vm14, %vm1531_vm13  ;;  %v1476_v36 = vand.u32 2147483648, %v3555_v25 }
 0x394   : > { %v3559_v45 = vmul.f32 %v1403_v38, %v1258_v9  ;;  %2484 = vrcp.f32 %v3511_v5  ;;  %v1527_v39 = vsub.f32 1.0, %v1526_v37  ;;  %vm1470_vm5 = vweird.f32 %v3555_v25 }
 0x395   : > { %v1261_v56 = vpop.f32.mrf.mxu0  ;;  %1865 = vrot.lane.b32.xlu2 %v1599_v23, %s2667_s21  ;;  %v1474_v20 = vand.u32 2147483647, %v3555_v25  ;;  %v1581_v38 = vand.u32 2147483648, %v3511_v5  ;;  %vm1575_vm8 = vweird.f32 %v3511_v5  ;;  %v1477_v55 = vor.u32 1.1754944e-38, %v1476_v36 }
 0x396   : > { %v3564_v51 = vmul.f32 %v1418_v15, %v1261_v56  ;;  %2273 = vmatmul.msk.f32.gmra.mxu3 %vm823_vm2, %v2479_v52  ;;  %v1528_v4 = vmul.f32 %v2481_v61, %v1527_v39  ;;  %v3595_v52 = vpop.xlane.xlu2 %1071  ;;  %v1579_v15 = vand.u32 2147483647, %v3511_v5 }
 0x397   : > { %vm1475_vm10 = vcmp.eq.f32.partialorder %v1474_v20, 8.507059e+37 }
 0x398   : > { %v1529_v34 = vadd.f32 %v2481_v61, %v1528_v4  ;;  %vm1580_vm12 = vcmp.eq.f32.partialorder %v1579_v15, 8.507059e+37 }
 0x399   : > { %v2483_v46 = vpop.eup %2482 }
 0x39a   : > { %v1300_v21 = vpop.f32.mrf.mxu3  ;;  %v3579_v0 = vpop.eup %2484  ;;  %v1466_v41 = vmul.f32 %v2483_v46, %v3555_v25  ;;  %v1533_v54 = vsel %vm1532_vm15, %v2481_v61, %v1529_v34  ;;  %vm1471_vm3 = vweird.f32 %v2483_v46 }
 0x39b   : > { %v1614_v43 = vmul.f32 %v1613_v1, %v1300_v21  ;;  %v3574_v32 = vpop.xlane.xlu1 %1044  ;;  %v1571_v8 = vmul.f32 %v3579_v0, %v3511_v5  ;;  %v1538_v49 = vsel %vm1535_vm4, %v1537_v3, %v1533_v54  ;;  %vm3617_vm6 = vmor %vm1470_vm5, %vm1471_vm3  ;;  %vm1576_vm7 = vweird.f32 %v3579_v0 }
 0x39c   : > { %2486 = vrcp.f32 %v3574_v32  ;;  %v1467_v9 = vsub.f32 1.0, %v1466_v41  ;;  %v3622_v27 = vmul.f32 %v1538_v49, %v3430_v42  ;;  %vm3634_vm9 = vmor %vm1575_vm8, %vm1576_vm7  ;;  %v1582_v1 = vor.u32 1.1754944e-38, %v1581_v38 }
 0x39d   : > { %v3576_v14 = vpop.f32.mrf.mxu0  ;;  %1867 = vrot.lane.b32.xlu2 %v1614_v43, %s2667_s21  ;;  %v1572_v17 = vsub.f32 1.0, %v1571_v8  ;;  %v3644_v43 = vpop.xlane.xlu0 %1080  ;;  %v1491_v41 = vand.u32 2147483648, %v3574_v32  ;;  %vm1485_vm13 = vweird.f32 %v3574_v32 }
 0x39e   : > { %v1468_v44 = vmul.f32 %v2483_v46, %v1467_v9  ;;  %v3630_v59 = vpop.xlane.xlu2 %1074 }
 0x39f   : > { %v1573_v18 = vmul.f32 %v3579_v0, %v1572_v17  ;;  %v1492_v2 = vor.u32 1.1754944e-38, %v1491_v41 }
 0x3a0   : > { %v1469_v53 = vadd.f32 %v2483_v46, %v1468_v44 }
 0x3a1   : > { %v1574_v33 = vadd.f32 %v3579_v0, %v1573_v18 }
 0x3a2   : > { %v3583_v6 = vpop.f32.mrf.mxu3  ;;  %v3591_v11 = vpop.eup %2486  ;;  %v1473_v56 = vsel %vm3617_vm6, %v2483_v46, %v1469_v53 }
 0x3a3   : > { %v3587_v40 = vpop.xlane.xlu1 %1047  ;;  %v1481_v22 = vmul.f32 %v3591_v11, %v3574_v32  ;;  %v1578_v21 = vsel %vm3634_vm9, %v3579_v0, %v1574_v33  ;;  %v1478_v37 = vsel %vm1475_vm10, %v1477_v55, %v1473_v56  ;;  %vm1486_vm11 = vweird.f32 %v3591_v11 }
 0x3a4   : > { %2488 = vrcp.f32 %v3587_v40  ;;  %v1583_v4 = vsel %vm1580_vm12, %v1582_v1, %v1578_v21  ;;  %v1489_v0 = vand.u32 2147483647, %v3574_v32  ;;  %vm1487_vm14 = vmor %vm1485_vm13, %vm1486_vm11  ;;  %v1506_v32 = vand.u32 2147483648, %v3587_v40 }
 0x3a5   : > { %v3589_v10 = vpop.f32.mrf.mxu0  ;;  %v1482_v19 = vsub.f32 1.0, %v1481_v22  ;;  %v3654_v9 = vmul.f32 %v1583_v4, %v3509_v47  ;;  %v3665_v3 = vpop.xlane.xlu0 %1089  ;;  %vm1500_vm4 = vweird.f32 %v3587_v40  ;;  %v1504_v53 = vand.u32 2147483647, %v3587_v40 }
 0x3a6   : > { %vm1490_vm15 = vcmp.eq.f32.partialorder %v1489_v0, 8.507059e+37  ;;  %v3662_v18 = vpop.xlane.xlu2 %1077  ;;  %vm1620_vm13 = vweird.f32 %v3595_v52 }
 0x3a7   : > { %v1483_v25 = vmul.f32 %v3591_v11, %v1482_v19  ;;  %vm1505_vm6 = vcmp.eq.f32.partialorder %v1504_v53, 8.507059e+37 }
 0x3a9   : > { %v1484_v39 = vadd.f32 %v3591_v11, %v1483_v25  ;;  %v1034_v25 = vsel %vm823_vm2, %v3373_v24, 0.0 }
 0x3aa   : > { %v3601_v31 = vpop.f32.mrf.mxu3  ;;  %v3606_v13 = vpop.eup %2488 }
 0x3ab   : > { %v3604_v12 = vpop.xlane.xlu1 %1083  ;;  %v1496_v29 = vmul.f32 %v3606_v13, %v3587_v40  ;;  %v1488_v17 = vsel %vm1487_vm14, %v3591_v11, %v1484_v39  ;;  %vm1501_vm3 = vweird.f32 %v3606_v13 }
 0x3ac   : > { %v1493_v47 = vsel %vm1490_vm15, %v1492_v2, %v1488_v17  ;;  %vm1502_vm5 = vmor %vm1500_vm4, %vm1501_vm3  ;;  %vm1650_vm15 = vweird.f32 %v3662_v18 }
 0x3ad   : > { %v3608_v63 = vpop.f32.mrf.mxu0  ;;  %v1497_v42 = vsub.f32 1.0, %v1496_v29  ;;  %v1507_v29 = vor.u32 1.1754944e-38, %v1506_v32  ;;  %v3683_v55 = vpop.xlane.xlu0 %1092  ;;  %v1656_v32 = vand.u32 2147483648, %v3662_v18 }
 0x3ae   : > { %v1729_v53 = vand.u32 2147483647, %v3683_v55 }
 0x3af   : > { %v1498_v8 = vmul.f32 %v3606_v13, %v1497_v42 }
 0x3b1   : > { %v1499_v30 = vadd.f32 %v3606_v13, %v1498_v8 }
 0x3b2   : > { %v3632_v60 = vpop.f32.mrf.mxu3 }
 0x3b3   : > { %v3638_v62 = vpop.xlane.xlu1 %1050  ;;  %v1503_v49 = vsel %vm1502_vm5, %v3606_v13, %v1499_v30  ;;  %v1626_v30 = vand.u32 2147483648, %v3595_v52 }
 0x3b4   : > { %2490 = vrcp.f32 %v3638_v62  ;;  %v1508_v20 = vsel %vm1505_vm6, %v1507_v29, %v1503_v49  ;;  %v1521_v23 = vand.u32 2147483648, %v3638_v62  ;;  %vm1515_vm8 = vweird.f32 %v3638_v62 }
 0x3b5   : > { %v1273_v5 = vpop.f32.mrf.mxu0  ;;  %2492 = vrcp.f32 %v3595_v52  ;;  %v1509_v15 = vmul.f32 %v1508_v20, %v3412_v58  ;;  %v1519_v13 = vand.u32 2147483647, %v3638_v62  ;;  %v3705_v17 = vpop.xlane.xlu0 %1095  ;;  %v1627_v29 = vor.u32 1.1754944e-38, %v1626_v30 }
 0x3b6   : > { %v1479_v46 = vmul.f32 %v1478_v37, %v1273_v5  ;;  %2494 = vrcp.f32 %v3662_v18  ;;  %v1522_v24 = vor.u32 1.1754944e-38, %v1521_v23  ;;  %v1657_v20 = vor.u32 1.1754944e-38, %v1656_v32 }
 0x3b7   : > { %2496 = vrcp.f32 %v3604_v12  ;;  %vm1520_vm10 = vcmp.eq.f32.partialorder %v1519_v13, 8.507059e+37 }
 0x3b8   : > { %1833 = vrot.lane.b32.xlu1 %v1479_v46, %s2667_s21  ;;  %2498 = vrcp.f32 %v3665_v3 }
 0x3b9   : > { %2500 = vrcp.f32 %v3683_v55 }
 0x3ba   : > { %v2491_v34 = vpop.eup %2490  ;;  %v3658_v44 = vpop.f32.mrf.mxu3  ;;  %2502 = vrcp.f32 %v3705_v17 }
 0x3bb   : > { %v1511_v22 = vmul.f32 %v2491_v34, %v3638_v62  ;;  %vm1516_vm7 = vweird.f32 %v2491_v34  ;;  %v3673_v38 = vpop.eup %2492  ;;  %2504 = vrcp.f32 %v3630_v59 }
 0x3bc   : > { %v2495_v40 = vpop.eup %2494  ;;  %vm1517_vm9 = vmor %vm1515_vm8, %vm1516_vm7  ;;  %v1616_v42 = vmul.f32 %v3673_v38, %v3595_v52  ;;  %vm1621_vm11 = vweird.f32 %v3673_v38  ;;  %vm1680_vm8 = vweird.f32 %v3604_v12 }
 0x3bd   : > { %v1276_v54 = vpop.f32.mrf.mxu0  ;;  %v1512_v11 = vsub.f32 1.0, %v1511_v22  ;;  %v1646_v21 = vmul.f32 %v2495_v40, %v3662_v18  ;;  %v3691_v5 = vpop.eup %2496  ;;  %vm1651_vm12 = vweird.f32 %v2495_v40  ;;  %vm3714_vm14 = vmor %vm1620_vm13, %vm1621_vm11 }
 0x3be   : > { %v1494_v19 = vmul.f32 %v1493_v47, %v1276_v54  ;;  %v1617_v62 = vsub.f32 1.0, %v1616_v42  ;;  %v3694_v46 = vpop.eup %2498  ;;  %v1676_v4 = vmul.f32 %v3691_v5, %v3604_v12  ;;  %vm3721_vm3 = vmor %vm1650_vm15, %vm1651_vm12  ;;  %vm1681_vm6 = vweird.f32 %v3691_v5 }
 0x3bf   : > { %v1513_v36 = vmul.f32 %v2491_v34, %v1512_v11  ;;  %v1647_v1 = vsub.f32 1.0, %v1646_v21  ;;  %v1706_v0 = vmul.f32 %v3694_v46, %v3665_v3  ;;  %v3712_v54 = vpop.eup %2500  ;;  %v1624_v11 = vand.u32 2147483647, %v3595_v52 }
 0x3c0   : > { %1835 = vrot.lane.b32.xlu0 %v1494_v19, %s2667_s21  ;;  %v1618_v41 = vmul.f32 %v3673_v38, %v1617_v62  ;;  %v1654_v19 = vand.u32 2147483647, %v3662_v18  ;;  %v1721_v18 = vmul.f32 %v3712_v54, %v3683_v55  ;;  %vm1711_vm7 = vweird.f32 %v3694_v46 }
 0x3c1   : > { %v1514_v33 = vadd.f32 %v2491_v34, %v1513_v36  ;;  %v1648_v8 = vmul.f32 %v2495_v40, %v1647_v1  ;;  %v1707_v22 = vsub.f32 1.0, %v1706_v0  ;;  %vm1625_vm4 = vcmp.eq.f32.partialorder %v1624_v11, 8.507059e+37 }
 0x3c2   : > { %v3677_v56 = vpop.f32.mrf.mxu3  ;;  %vm1655_vm5 = vcmp.eq.f32.partialorder %v1654_v19, 8.507059e+37  ;;  %v1686_v42 = vand.u32 2147483648, %v3604_v12  ;;  %v1731_v19 = vand.u32 2147483648, %v3683_v55  ;;  %vm1725_vm15 = vweird.f32 %v3683_v55 }
 0x3c3   : > { %v1518_v61 = vsel %vm1517_vm9, %v2491_v34, %v1514_v33  ;;  %v1677_v34 = vsub.f32 1.0, %v1676_v4  ;;  %v1649_v2 = vadd.f32 %v2495_v40, %v1648_v8  ;;  %v1708_v23 = vmul.f32 %v3694_v46, %v1707_v22  ;;  %vm3753_vm9 = vmor %vm1680_vm8, %vm1681_vm6 }
 0x3c4   : > { %v1523_v58 = vsel %vm1520_vm10, %v1522_v24, %v1518_v61  ;;  %v1722_v61 = vsub.f32 1.0, %v1721_v18  ;;  %v3747_v24 = vpop.eup %2502  ;;  %vm1710_vm10 = vweird.f32 %v3665_v3  ;;  %v1687_v4 = vor.u32 1.1754944e-38, %v1686_v42 }
 0x3c5   : > { %v1524_v37 = vmul.f32 %v1523_v58, %v3420_v35  ;;  %v1619_v35 = vadd.f32 %v3673_v38, %v1618_v41  ;;  %v1653_v52 = vsel %vm3721_vm3, %v2495_v40, %v1649_v2  ;;  %v1678_v49 = vmul.f32 %v3691_v5, %v1677_v34  ;;  %vm3766_vm11 = vmor %vm1710_vm10, %vm1711_vm7  ;;  %v3772_v41 = vpop.eup %2504 }
 0x3c6   : > { %1035 = vadd.xlane.f32.xlu2 %v1034_v25  ;;  %v3738_v25 = vpop.xlane.xlu0 %1098  ;;  %v1709_v21 = vadd.f32 %v3694_v46, %v1708_v23  ;;  %v1684_v58 = vand.u32 2147483647, %v3604_v12  ;;  %vm1740_vm6 = vweird.f32 %v3705_v17  ;;  %vm1636_vm7 = vweird.f32 %v3772_v41 }
 0x3c7   : > { %v1623_v36 = vsel %vm3714_vm14, %v3673_v38, %v1619_v35  ;;  %v1658_v38 = vsel %vm1655_vm5, %v1657_v20, %v1653_v52  ;;  %2506 = vrcp.f32 %v3738_v25  ;;  %vm1726_vm14 = vweird.f32 %v3712_v54 }
 0x3c8   : > { %1837 = vrot.lane.b32.xlu0 %v1509_v15, %s2667_s21  ;;  %v1659_v40 = vmul.f32 %v1658_v38, %v3632_v60  ;;  %v1679_v15 = vadd.f32 %v3691_v5, %v1678_v49  ;;  %v1716_v60 = vand.u32 2147483648, %v3665_v3  ;;  %v1713_v8 = vsel %vm3766_vm11, %v3694_v46, %v1709_v21  ;;  %vm1727_vm3 = vmor %vm1725_vm15, %vm1726_vm14 }
 0x3c9   : > { %vm1685_vm12 = vcmp.eq.f32.partialorder %v1684_v58, 8.507059e+37  ;;  %vm1741_vm5 = vweird.f32 %v3747_v24  ;;  %v1641_v42 = vand.u32 2147483648, %v3630_v59  ;;  %vm1755_vm14 = vweird.f32 %v3738_v25 }
 0x3ca   : > { %v3696_v39 = vpop.f32.mrf.mxu3  ;;  %v1683_v12 = vsel %vm3753_vm9, %v3691_v5, %v1679_v15  ;;  %v1723_v5 = vmul.f32 %v3712_v54, %v1722_v61  ;;  %v1717_v0 = vor.u32 1.1754944e-38, %v1716_v60  ;;  %v1744_v15 = vand.u32 2147483647, %v3705_v17  ;;  %vm1742_vm8 = vmor %vm1740_vm6, %vm1741_vm5 }
 0x3cb   : > { %v1688_v35 = vsel %vm1685_vm12, %v1687_v4, %v1683_v12  ;;  %vm1635_vm9 = vweird.f32 %v3630_v59  ;;  %v1642_v1 = vor.u32 1.1754944e-38, %v1641_v42 }
 0x3cc   : > { %v1689_v2 = vmul.f32 %v1688_v35, %v3677_v56  ;;  %v1724_v46 = vadd.f32 %v3712_v54, %v1723_v5  ;;  %vm1637_vm10 = vmor %vm1635_vm9, %vm1636_vm7  ;;  %vm1745_vm11 = vcmp.eq.f32.partialorder %v1744_v15, 8.507059e+37 }
 0x3cd   : > { %v3787_v11 = vpop.eup %2506 }
 0x3ce   : > { %v3783_v32 = vpop.xlane.xlu0 %1101  ;;  %v1728_v52 = vsel %vm1727_vm3, %v3712_v54, %v1724_v46  ;;  %v1746_v54 = vand.u32 2147483648, %v3705_v17  ;;  %vm1756_vm12 = vweird.f32 %v3787_v11 }
 0x3cf   : > { %2508 = vrcp.f32 %v3783_v32  ;;  %vm1757_vm15 = vmor %vm1755_vm14, %vm1756_vm12  ;;  %vm1770_vm6 = vweird.f32 %v3783_v32 }
 0x3d0   : > { %1839 = vrot.lane.b32.xlu0 %v1524_v37, %s2667_s21  ;;  %v1031_v37 = vsel %vm823_vm2, %v3364_v50, 0.0  ;;  %v1631_v50 = vmul.f32 %v3772_v41, %v3630_v59  ;;  %2510 = vrcp.f32 %v3644_v43  ;;  %v1747_v62 = vor.u32 1.1754944e-38, %v1746_v54 }
 0x3d2   : > { %v1321_v33 = vpop.f32.mrf.mxu3  ;;  %v1632_v56 = vsub.f32 1.0, %v1631_v50 }
 0x3d4   : > { %v1633_v55 = vmul.f32 %v3772_v41, %v1632_v56 }
 0x3d5   : > { %v3803_v38 = vpop.eup %2508 }
 0x3d6   : > { %v1634_v61 = vadd.f32 %v3772_v41, %v1633_v55  ;;  %v1766_v21 = vmul.f32 %v3803_v38, %v3783_v32 }
 0x3d8   : > { %1841 = vrot.lane.b32.xlu0 %v3622_v27, %s2667_s21  ;;  %v1628_v27 = vsel %vm1625_vm4, %v1627_v29, %v1623_v36  ;;  %v1751_v36 = vmul.f32 %v3787_v11, %v3738_v25  ;;  %v1732_v29 = vor.u32 1.1754944e-38, %v1731_v19  ;;  %vm1730_vm4 = vcmp.eq.f32.partialorder %v1729_v53, 8.507059e+37 }
 0x3d9   : > { %v1629_v13 = vmul.f32 %v1628_v27, %v3583_v6  ;;  %v1714_v6 = vand.u32 2147483647, %v3665_v3  ;;  %v1736_v3 = vmul.f32 %v3747_v24, %v3705_v17  ;;  %v1639_v17 = vand.u32 2147483647, %v3630_v59 }
 0x3da   : > { %v1324_v34 = vpop.f32.mrf.mxu3  ;;  %v1733_v18 = vsel %vm1730_vm4, %v1732_v29, %v1728_v52  ;;  %v1752_v20 = vsub.f32 1.0, %v1751_v36  ;;  %v1638_v12 = vsel %vm1637_vm10, %v3772_v41, %v1634_v61  ;;  %v1759_v41 = vand.u32 2147483647, %v3738_v25 }
 0x3db   : > { %vm1715_vm13 = vcmp.eq.f32.partialorder %v1714_v6, 8.507059e+37  ;;  %v1737_v30 = vsub.f32 1.0, %v1736_v3  ;;  %v1767_v3 = vsub.f32 1.0, %v1766_v21  ;;  %vm1771_vm4 = vweird.f32 %v3803_v38 }
 0x3dc   : > { %v1718_v22 = vsel %vm1715_vm13, %v1717_v0, %v1713_v8  ;;  %v1753_v60 = vmul.f32 %v3787_v11, %v1752_v20  ;;  %vm1640_vm13 = vcmp.eq.f32.partialorder %v1639_v17, 8.507059e+37  ;;  %v1761_v8 = vand.u32 2147483648, %v3738_v25  ;;  %vm3849_vm7 = vmor %vm1770_vm6, %vm1771_vm4 }
 0x3dd   : > { %v1719_v47 = vmul.f32 %v1718_v22, %v1321_v33  ;;  %v1738_v49 = vmul.f32 %v3747_v24, %v1737_v30  ;;  %v1734_v33 = vmul.f32 %v1733_v18, %v1324_v34  ;;  %v1643_v5 = vsel %vm1640_vm13, %v1642_v1, %v1638_v12 }
 0x3de   : > { %1873 = vrot.lane.b32.xlu2 %v1659_v40, %s2667_s21  ;;  %v3806_v40 = vpop.xlane.xlu2 %1086  ;;  %v1644_v34 = vmul.f32 %v1643_v5, %v3601_v31  ;;  %v1762_v22 = vor.u32 1.1754944e-38, %v1761_v8  ;;  %vm1760_vm3 = vcmp.eq.f32.partialorder %v1759_v41, 8.507059e+37  ;;  %v1776_v31 = vand.u32 2147483648, %v3783_v32 }
 0x3df   : > { %v1739_v27 = vadd.f32 %v3747_v24, %v1738_v49  ;;  %v1774_v53 = vand.u32 2147483647, %v3783_v32  ;;  %v1671_v49 = vand.u32 2147483648, %v3644_v43  ;;  %v1669_v18 = vand.u32 2147483647, %v3644_v43 }
 0x3e0   : > { %1869 = vrot.lane.b32.xlu0 %v1629_v13, %s2667_s21  ;;  %v3811_v13 = vpop.eup %2510  ;;  %v1777_v20 = vor.u32 1.1754944e-38, %v1776_v31 }
 0x3e1   : > { %v1743_v58 = vsel %vm1742_vm8, %v3747_v24, %v1739_v27  ;;  %v1661_v6 = vmul.f32 %v3811_v13, %v3644_v43  ;;  %v1754_v24 = vadd.f32 %v3787_v11, %v1753_v60  ;;  %vm1666_vm5 = vweird.f32 %v3811_v13 }
 0x3e2   : > { %1032 = vadd.xlane.f32.xlu1 %v1031_v37  ;;  %v1327_v23 = vpop.f32.mrf.mxu3  ;;  %v1748_v37 = vsel %vm1745_vm11, %v1747_v62, %v1743_v58  ;;  %vm1665_vm8 = vweird.f32 %v3644_v43  ;;  %vm1775_vm10 = vcmp.eq.f32.partialorder %v1774_v53, 8.507059e+37  ;;  %v1672_v43 = vor.u32 1.1754944e-38, %v1671_v49 }
 0x3e3   : > { %v1749_v4 = vmul.f32 %v1748_v37, %v1327_v23  ;;  %v1662_v59 = vsub.f32 1.0, %v1661_v6  ;;  %v1758_v50 = vsel %vm1757_vm15, %v3787_v11, %v1754_v24  ;;  %vm3858_vm9 = vmor %vm1665_vm8, %vm1666_vm5  ;;  %vm1670_vm11 = vcmp.eq.f32.partialorder %v1669_v18, 8.507059e+37 }
 0x3e4   : > { %v1763_v25 = vsel %vm1760_vm3, %v1762_v22, %v1758_v50  ;;  %v1701_v53 = vand.u32 2147483648, %v3806_v40 }
 0x3e6   : > { %1877 = vrot.lane.b32.xlu2 %v1689_v2, %s2667_s21  ;;  %v3828_v0 = vpop.xlane.xlu2 %1107  ;;  %v1768_v2 = vmul.f32 %v3803_v38, %v1767_v3 }
 0x3e7   : > { %2512 = vrcp.f32 %v3828_v0  ;;  %v1806_v50 = vand.u32 2147483648, %v3828_v0  ;;  %vm1800_vm4 = vweird.f32 %v3828_v0 }
 0x3e8   : > { %1897 = vrot.lane.b32.xlu0 %v1719_v47, %s2668_s22  ;;  %v1663_v47 = vmul.f32 %v3811_v13, %v1662_v59  ;;  %v1769_v19 = vadd.f32 %v3803_v38, %v1768_v2  ;;  %v1804_v2 = vand.u32 2147483647, %v3828_v0 }
 0x3ea   : > { %v1330_v35 = vpop.f32.mrf.mxu3  ;;  %v1664_v11 = vadd.f32 %v3811_v13, %v1663_v47  ;;  %v1773_v55 = vsel %vm3849_vm7, %v3803_v38, %v1769_v19  ;;  %vm1805_vm7 = vcmp.eq.f32.partialorder %v1804_v2, 8.507059e+37 }
 0x3eb   : > { %v1764_v46 = vmul.f32 %v1763_v25, %v1330_v35  ;;  %v1778_v54 = vsel %vm1775_vm10, %v1777_v20, %v1773_v55  ;;  %v1807_v25 = vor.u32 1.1754944e-38, %v1806_v50  ;;  %v1702_v55 = vor.u32 1.1754944e-38, %v1701_v53  ;;  %v1950_v20 = vld [vmem:[#allocation5 + $0x18] sm:$0xff] }
 0x3ec   : > { %v1668_v23 = vsel %vm3858_vm9, %v3811_v13, %v1664_v11  ;;  %1987 = vmatpush.msra.mxu0 %v1950_v20 }
 0x3ed   : > { %v3847_v56 = vpop.eup %2512  ;;  %v1673_v58 = vsel %vm1670_vm11, %v1672_v43, %v1668_v23  ;;  %vm1695_vm11 = vweird.f32 %v3806_v40 }
 0x3ee   : > { %v1796_v38 = vmul.f32 %v3847_v56, %v3828_v0  ;;  %v1674_v13 = vmul.f32 %v1673_v58, %v3658_v44  ;;  %vm1801_vm3 = vweird.f32 %v3847_v56 }
 0x3ef   : > { %vm1802_vm5 = vmor %vm1800_vm4, %vm1801_vm3  ;;  %vm1938_vm3 = vcmask 195584  }
 0x3f0   : > { %1899 = vrot.lane.b32.xlu0 %v1734_v33, %s2668_s22  ;;  %v1797_v60 = vsub.f32 1.0, %v1796_v38  ;;  %v1949_v38 = vld [vmem:[#allocation5 + $0x10] sm:$0xff] }
 0x3f1   : > { %1988 = vmatpush.msra.mxu0 %v1949_v38 }
 0x3f2   : > { %v1333_v29 = vpop.f32.mrf.mxu3  ;;  %v1798_v44 = vmul.f32 %v3847_v56, %v1797_v60 }
 0x3f3   : > { %v1779_v61 = vmul.f32 %v1778_v54, %v1333_v29  ;;  %v1948_v54 = vld [vmem:[#allocation5 + $0x8] sm:$0xff] }
 0x3f4   : > { %v1799_v35 = vadd.f32 %v3847_v56, %v1798_v44  ;;  %1989 = vmatpush.msra.mxu0 %v1948_v54 }
 0x3f8   : > { %1901 = vrot.lane.b32.xlu0 %v1749_v4, %s2668_s22 }
 0x3fa   : > { %v1105_v30 = vpop.xlane.xlu1 %1104 }
 0x3fb   : > { %1871 = vrot.lane.b32.xlu1 %v1644_v34, %s2667_s21  ;;  %2514 = vrcp.f32 %v1105_v30  ;;  %v1791_v42 = vand.u32 2147483648, %v1105_v30  ;;  %v1789_v21 = vand.u32 2147483647, %v1105_v30  ;;  %vm1785_vm13 = vweird.f32 %v1105_v30 }
 0x3fc   : > { %2516 = vrcp.f32 %v3806_v40 }
 0x3fd   : > { %v1792_v12 = vor.u32 1.1754944e-38, %v1791_v42  ;;  %vm1790_vm15 = vcmp.eq.f32.partialorder %v1789_v21, 8.507059e+37  ;;  %v1866_v42 = vpop.permute.xlu2 %1865 }
 0x400   : > { %1903 = vrot.lane.b32.xlu0 %v1764_v46, %s2668_s22 }
 0x401   : > { %v2515_v52 = vpop.eup %2514 }
 0x402   : > { %v1781_v33 = vmul.f32 %v2515_v52, %v1105_v30  ;;  %vm1786_vm12 = vweird.f32 %v2515_v52  ;;  %v2517_v62 = vpop.eup %2516  ;;  %v1803_v30 = vsel %vm1802_vm5, %v3847_v56, %v1799_v35 }
 0x403   : > { %1843 = vrot.lane.b32.xlu1 %v3462_v48, %s2667_s21  ;;  %vm1787_vm14 = vmor %vm1785_vm13, %vm1786_vm12  ;;  %v1691_v24 = vmul.f32 %v2517_v62, %v3806_v40  ;;  %v1808_v19 = vsel %vm1805_vm7, %v1807_v25, %v1803_v30  ;;  %vm1696_vm10 = vweird.f32 %v2517_v62 }
 0x404   : > { %v3869_v27 = vpop.xlane.xlu0 %1110  ;;  %v1782_v15 = vsub.f32 1.0, %v1781_v33  ;;  %vm1697_vm13 = vmor %vm1695_vm11, %vm1696_vm10 }
 0x405   : > { %2518 = vrcp.f32 %v3869_v27  ;;  %v1692_v5 = vsub.f32 1.0, %v1691_v24  ;;  %v1821_v46 = vand.u32 2147483648, %v3869_v27  ;;  %vm1815_vm8 = vweird.f32 %v3869_v27  ;;  %v1868_v60 = vpop.permute.xlu2 %1867 }
 0x406   : > { %v1783_v48 = vmul.f32 %v2515_v52, %v1782_v15  ;;  %v1819_v0 = vand.u32 2147483647, %v3869_v27  ;;  %v1947_v15 = vld [vmem:[#allocation5] sm:$0xff] }
 0x407   : > { %v1693_v22 = vmul.f32 %v2517_v62, %v1692_v5  ;;  %v1822_v36 = vor.u32 1.1754944e-38, %v1821_v46  ;;  %1990 = vmatpush.msra.mxu0 %v1947_v15 }
 0x408   : > { %1905 = vrot.lane.b32.xlu0 %v1779_v61, %s2668_s22  ;;  %v1784_v17 = vadd.f32 %v2515_v52, %v1783_v48  ;;  %vm1820_vm12 = vcmp.eq.f32.partialorder %v1819_v0, 8.507059e+37 }
 0x409   : > { %v1336_v6 = vpop.f32.mrf.mxu3 }
 0x40a   : > { %v1788_v37 = vsel %vm1787_vm14, %v2515_v52, %v1784_v17  ;;  %v1699_v52 = vand.u32 2147483647, %v3806_v40  ;;  %v1037_v40 = vsel %vm823_vm2, %v3384_v57, 0.0 }
 0x40b   : > { %v2519_v1 = vpop.eup %2518  ;;  %1875 = vrot.lane.b32.xlu1 %v1674_v13, %s2667_s21  ;;  %v1793_v4 = vsel %vm1790_vm15, %v1792_v12, %v1788_v37  ;;  %vm1921_vm15 = vcmask 64512  }
 0x40c   : > { %v1811_v3 = vmul.f32 %v2519_v1, %v3869_v27  ;;  %v1794_v8 = vmul.f32 %v1793_v4, %v1336_v6  ;;  %vm1816_vm6 = vweird.f32 %v2519_v1  ;;  %vm1700_vm14 = vcmp.eq.f32.partialorder %v1699_v52, 8.507059e+37 }
 0x40d   : > { %vm1817_vm9 = vmor %vm1815_vm8, %vm1816_vm6 }
 0x40e   : > { %v1812_v59 = vsub.f32 1.0, %v1811_v3  ;;  %1907 = vrot.lane.b32.xlu2 %v1794_v8, %s2668_s22 }
 0x410   : > { %v1813_v41 = vmul.f32 %v2519_v1, %v1812_v59 }
 0x411   : > { %v1339_v34 = vpop.f32.mrf.mxu3 }
 0x412   : > { %v1814_v47 = vadd.f32 %v2519_v1, %v1813_v41  ;;  %v1809_v31 = vmul.f32 %v1808_v19, %v1339_v34 }
 0x413   : > { %1845 = vrot.lane.b32.xlu1 %v3521_v28, %s2667_s21  ;;  %v1694_v28 = vadd.f32 %v2517_v62, %v1693_v22 }
 0x414   : > { %v1818_v11 = vsel %vm1817_vm9, %v2519_v1, %v1814_v47 }
 0x415   : > { %v1698_v49 = vsel %vm1697_vm13, %v2517_v62, %v1694_v28 }
 0x416   : > { %1847 = vrot.lane.b32.xlu2 %v3654_v9, %s2667_s21  ;;  %v1823_v9 = vsel %vm1820_vm12, %v1822_v36, %v1818_v11  ;;  %v1703_v32 = vsel %vm1700_vm14, %v1702_v55, %v1698_v49 }
 0x417   : > { %v1704_v18 = vmul.f32 %v1703_v32, %v3696_v39 }
 0x419   : > { %v1342_v56 = vpop.f32.mrf.mxu3 }
 0x41a   : > { %v1824_v29 = vmul.f32 %v1823_v9, %v1342_v56 }
 0x41b   : > { %1909 = vrot.lane.b32.xlu1 %v1809_v31, %s2668_s22 }
 0x41e   : > { %1911 = vrot.lane.b32.xlu2 %v1824_v29, %s2668_s22 }
 0x423   : > { %1879 = vrot.lane.b32.xlu1 %v1704_v18, %s2667_s21 }
 0x42a   : > { %v1834_v39 = vpop.permute.xlu1 %1833 }
 0x42b   : > { %v1922_v48 = vsel %vm1921_vm15, %v3472_v16, %v1834_v39 }
 0x42c   : > { %v1930_v57 = vsel %vm629_vm1, %v1922_v48, %v1866_v42 }
 0x432   : > { %1038 = vadd.xlane.f32.xlu0 %v1037_v40  ;;  %v1836_v33 = vpop.permute.xlu0 %1835 }
 0x433   : > { %v1923_v17 = vsel %vm1921_vm15, %v3475_v26, %v1836_v33 }
 0x434   : > { %v1931_v6 = vsel %vm629_vm1, %v1923_v17, %v1868_v60 }
 0x439   : > { %v1036_v1 = vpop.xlane.xlu2 %1035 }
 0x43a   : > { %v1838_v23 = vpop.permute.xlu0 %1837  ;;  %v1446_v29 = vand.u32 2147483648, %v1036_v1  ;;  %vm1440_vm9 = vweird.f32 %v1036_v1  ;;  %v1444_v55 = vand.u32 2147483647, %v1036_v1 }
 0x43b   : > { %v1924_v3 = vsel %vm1921_vm15, %v3499_v7, %v1838_v23 }
 0x43c   : > { %v1447_v40 = vor.u32 1.1754944e-38, %v1446_v29  ;;  %vm1445_vm11 = vcmp.eq.f32.partialorder %v1444_v55, 8.507059e+37 }
 0x441   : > { %v1874_v35 = vpop.permute.xlu2 %1873 }
 0x442   : > { %v1840_v27 = vpop.permute.xlu0 %1839 }
 0x443   : > { %v1925_v41 = vsel %vm1921_vm15, %v3559_v45, %v1840_v27 }
 0x449   : > { %v1878_v31 = vpop.permute.xlu2 %1877 }
 0x44a   : > { %v1842_v43 = vpop.permute.xlu0 %1841 }
 0x44b   : > { %v1926_v0 = vsel %vm1921_vm15, %v3564_v51, %v1842_v43 }
 0x44c   : > { %v1934_v56 = vsel %vm629_vm1, %v1926_v0, %v1874_v35 }
 0x452   : > { %v1870_v61 = vpop.permute.xlu0 %1869 }
 0x453   : > { %v1932_v4 = vsel %vm629_vm1, %v1924_v3, %v1870_v61 }
 0x455   : > { %v1033_v58 = vpop.xlane.xlu1 %1032 }
 0x456   : > { %2520 = vrcp.f32 %v1033_v58  ;;  %v1431_v30 = vand.u32 2147483648, %v1033_v58  ;;  %vm1425_vm5 = vweird.f32 %v1033_v58  ;;  %v1429_v47 = vand.u32 2147483647, %v1033_v58 }
 0x457   : > { %2522 = vrcp.f32 %v1036_v1 }
 0x458   : > { %v1432_v19 = vor.u32 1.1754944e-38, %v1431_v30  ;;  %vm1430_vm7 = vcmp.eq.f32.partialorder %v1429_v47, 8.507059e+37 }
 0x45a   : > { %v1898_v21 = vpop.permute.xlu0 %1897 }
 0x45b   : > { %v1939_v13 = vsel %vm1938_vm3, %v1930_v57, %v1898_v21 }
 0x45c   : > { %2274 = vmatmul.msk.f32.vlgmr.msra.gmra.mxu0 %vm378_vm0, %v1939_v13  ;;  %v2521_v16 = vpop.eup %2520 }
 0x45d   : > { %v1421_v37 = vmul.f32 %v2521_v16, %v1033_v58  ;;  %v2523_v59 = vpop.eup %2522  ;;  %vm1426_vm4 = vweird.f32 %v2521_v16 }
 0x45e   : > { %v1436_v34 = vmul.f32 %v2523_v59, %v1036_v1  ;;  %vm1427_vm6 = vmor %vm1425_vm5, %vm1426_vm4  ;;  %vm1441_vm8 = vweird.f32 %v2523_v59 }
 0x45f   : > { %v1422_v8 = vsub.f32 1.0, %v1421_v37  ;;  %vm1442_vm10 = vmor %vm1440_vm9, %vm1441_vm8 }
 0x460   : > { %v1437_v46 = vsub.f32 1.0, %v1436_v34 }
 0x461   : > { %v1423_v5 = vmul.f32 %v2521_v16, %v1422_v8 }
 0x462   : > { %v1900_v62 = vpop.permute.xlu0 %1899  ;;  %v1438_v28 = vmul.f32 %v2523_v59, %v1437_v46 }
 0x463   : > { %v1940_v12 = vsel %vm1938_vm3, %v1931_v6, %v1900_v62  ;;  %v1424_v7 = vadd.f32 %v2521_v16, %v1423_v5 }
 0x464   : > { %2275 = vmatmul.msk.f32.gmra.mxu0 %vm378_vm0, %v1940_v12  ;;  %v1439_v49 = vadd.f32 %v2523_v59, %v1438_v28 }
 0x465   : > { %v1428_v45 = vsel %vm1427_vm6, %v2521_v16, %v1424_v7 }
 0x466   : > { %v1433_v11 = vsel %vm1430_vm7, %v1432_v19, %v1428_v45  ;;  %v1443_v20 = vsel %vm1442_vm10, %v2523_v59, %v1439_v49 }
 0x467   : > { %v1434_v52 = vmul.f32 %v1433_v11, %v3576_v14  ;;  %v1448_v14 = vsel %vm1445_vm11, %v1447_v40, %v1443_v20 }
 0x468   : > { %v1908_v18 = vpop.permute.xlu2 %1907  ;;  %v1449_v27 = vmul.f32 %v1448_v14, %v3589_v10 }
 0x46a   : > { %v1902_v24 = vpop.permute.xlu0 %1901 }
 0x46b   : > { %v1941_v26 = vsel %vm1938_vm3, %v1932_v4, %v1902_v24 }
 0x46c   : > { %2276 = vmatmul.msk.f32.gmra.mxu0 %vm378_vm0, %v1941_v26 }
 0x46d   : > { %v1872_v44 = vpop.permute.xlu1 %1871 }
 0x46e   : > { %v1933_v50 = vsel %vm629_vm1, %v1925_v41, %v1872_v44 }
 0x470   : > { %v1848_v57 = vpop.permute.xlu2 %1847 }
 0x472   : > { %v1904_v2 = vpop.permute.xlu0 %1903 }
 0x473   : > { %v1942_v22 = vsel %vm1938_vm3, %v1933_v50, %v1904_v2 }
 0x474   : > { %2277 = vmatmul.msk.f32.gmra.mxu0 %vm378_vm0, %v1942_v22 }
 0x475   : > { %v1844_v25 = vpop.permute.xlu1 %1843 }
 0x476   : > { %v1927_v51 = vsel %vm1921_vm15, %v1434_v52, %v1844_v25 }
 0x478   : > { %v1912_v1 = vpop.permute.xlu2 %1911 }
 0x47a   : > { %v1906_v53 = vpop.permute.xlu0 %1905 }
 0x47b   : > { %v1943_v36 = vsel %vm1938_vm3, %v1934_v56, %v1906_v53 }
 0x47c   : > { %2278 = vmatmul.msk.f32.gmra.mxu0 %vm378_vm0, %v1943_v36 }
 0x47d   : > { %v1876_v9 = vpop.permute.xlu1 %1875 }
 0x47e   : > { %v1935_v32 = vsel %vm629_vm1, %v1927_v51, %v1876_v9 }
 0x47f   : > { %v1944_v33 = vsel %vm1938_vm3, %v1935_v32, %v1908_v18 }
 0x484   : > { %2279 = vmatmul.msk.f32.gmra.mxu0 %vm378_vm0, %v1944_v33 }
 0x485   : > { %v1846_v23 = vpop.permute.xlu1 %1845 }
 0x486   : > { %v1928_v38 = vsel %vm1921_vm15, %v1449_v27, %v1846_v23 }
 0x487   : > { %v1936_v15 = vsel %vm629_vm1, %v1928_v38, %v1878_v31 }
 0x48d   : > { %v1910_v54 = vpop.permute.xlu1 %1909 }
 0x48e   : > { %v1945_v43 = vsel %vm1938_vm3, %v1936_v15, %v1910_v54 }
 0x48f   : > { %2280 = vmatmul.msk.f32.gmra.mxu0 %vm378_vm0, %v1945_v43 }
 0x495   : > { %v1880_v12 = vpop.permute.xlu1 %1879 }
 0x4a5   : > { %v1039_v61 = vpop.xlane.xlu0 %1038 }
 0x4a6   : > { %2524 = vrcp.f32 %v1039_v61  ;;  %v1461_v21 = vand.u32 2147483648, %v1039_v61  ;;  %v1459_v13 = vand.u32 2147483647, %v1039_v61  ;;  %vm1455_vm13 = vweird.f32 %v1039_v61 }
 0x4a8   : > { %v1462_v60 = vor.u32 1.1754944e-38, %v1461_v21  ;;  %vm1460_vm4 = vcmp.eq.f32.partialorder %v1459_v13, 8.507059e+37 }
 0x4ac   : > { %v2525_v39 = vpop.eup %2524 }
 0x4ad   : > { %v1451_v42 = vmul.f32 %v2525_v39, %v1039_v61  ;;  %vm1456_vm12 = vweird.f32 %v2525_v39 }
 0x4ae   : > { %vm1457_vm14 = vmor %vm1455_vm13, %vm1456_vm12 }
 0x4af   : > { %v1452_v48 = vsub.f32 1.0, %v1451_v42 }
 0x4b1   : > { %v1453_v58 = vmul.f32 %v2525_v39, %v1452_v48 }
 0x4b3   : > { %v1454_v10 = vadd.f32 %v2525_v39, %v1453_v58 }
 0x4b5   : > { %v1458_v17 = vsel %vm1457_vm14, %v2525_v39, %v1454_v10 }
 0x4b6   : > { %v1463_v62 = vsel %vm1460_vm4, %v1462_v60, %v1458_v17 }
 0x4b7   : > { %v1464_v6 = vmul.f32 %v1463_v62, %v3608_v63 }
 0x4b9   : > { %v1929_v16 = vsel %vm1921_vm15, %v1464_v6, %v1848_v57 }
 0x4ba   : > { %v1937_v37 = vsel %vm629_vm1, %v1929_v16, %v1880_v12  ;;  %vm2042_vm1 = vcmask 785408  }
 0x4bb   : > { %v1946_v3 = vsel %vm1938_vm3, %v1937_v37, %v1912_v1 }
 0x4bc   : > { %2281 = vmatmul.msk.f32.gmra.mxu0 %vm378_vm0, %v1946_v3 }
 0x4d9   : > { %v1992_v4 = vpop.f32.mrf.mxu0 }
 0x4e1   : > { %v1995_v24 = vpop.f32.mrf.mxu0 }
 0x4e2   : > { %2017 = vrot.lane.b32.xlu1 %v1995_v24, %s2669_s23 }
 0x4e9   : > { %v1998_v8 = vpop.f32.mrf.mxu0 }
 0x4ea   : > { %2021 = vrot.lane.b32.xlu2 %v1998_v8, %s2662_s14 }
 0x4f1   : > { %v2001_v26 = vpop.f32.mrf.mxu0 }
 0x4f2   : > { %2025 = vrot.lane.b32.xlu2 %v2001_v26, %s2664_s13 }
 0x4f9   : > { %v2004_v63 = vpop.f32.mrf.mxu0 }
 0x501   : > { %v2007_v44 = vpop.f32.mrf.mxu0 }
 0x502   : > { %2029 = vrot.lane.b32.xlu0 %v2007_v44, %s2669_s23  ;;  %s2606_s23 = scalar_lea.hbm %s3990_s7, 64 }
 0x503   : > { %p2608_p4 = scmp.lt.s32.totalorder %s2606_s23, %s2602_s20 }
 0x505   : > { %p2609_p7 = por %p2608_p4, %p2607_p3 }
 0x507   : > { %p2610_p8 = pnand %p2609_p7, %p2605_p2 }
 0x50c   : > { %v2010_v59 = vpop.f32.mrf.mxu0 }
 0x50d   : > { %2033 = vrot.lane.b32.xlu1 %v2010_v59, %s2662_s14 }
 0x539   : > { %v2013_v5 = vpop.f32.mrf.mxu0 }
 0x53a   : > { %2037 = vrot.lane.b32.xlu1 %v2013_v5, %s2664_s13  ;;  %s2063_s13 = sshll.u32 %s336_s9, 4  ;;  %s2064_s13 = int_to_ptr.vmem [resolvable:$true] %s2063_s13 }
 0x544   : > { %v2022_v35 = vpop.permute.xlu2 %2021 }
 0x54c   : > { %v2026_v2 = vpop.permute.xlu2 %2025 }
 0x554   : > { %v2018_v41 = vpop.permute.xlu1 %2017 }
 0x555   : > { %v2040_v34 = vsel %vm378_vm0, %v1992_v4, %v2018_v41 }
 0x556   : > { %v2041_v50 = vsel %vm823_vm2, %v2040_v34, %v2022_v35 }
 0x557   : > { %v2043_v7 = vsel %vm2042_vm1, %v2041_v50, %v2026_v2 }
 0x558   : > { %2047 = vst [vmem:[%s336_s9] sm:$0xff] %v2043_v7 }
 0x574   : > { %v2030_v30 = vpop.permute.xlu0 %2029 }
 0x575   : > { %v2044_v47 = vsel %vm378_vm0, %v2004_v63, %v2030_v30 }
 0x57f   : > { %v2034_v22 = vpop.permute.xlu1 %2033 }
 0x580   : > { %v2045_v25 = vsel %vm823_vm2, %v2044_v47, %v2034_v22 }
 0x5ac   : > { %v2038_v46 = vpop.permute.xlu1 %2037 }
 0x5ad   : > { %v2046_v0 = vsel %vm2042_vm1, %v2045_v25, %v2038_v46 }
 0x5ae   : > { %2048 = vst [vmem:[%s336_s9 + $0x8] sm:$0xff] %v2046_v0 }
 0x5af   : > { %2613 = shalt.err (!%p2610_p8)
}
 0x5b0   : > { %2316 = dma.vmem_to_hbm [thread:$0]  (%p2748_p5), %s2064_s13, 256, %s2066_s18, %s2050_s19  }
 0x5b1 PF: > { %p2333_p9 = scmp.ge.s32.totalorder %s2656_s27, 2  ;;  %s2077_s29 = sand.u32 1, %s2644_s24  }
 0x5b2   : > { %s2078_s9 = scalar_lea.sflag [#allocation4], %s2077_s29 }
 0x5b3   : > { %p2326_p10 = pnand %p2333_p9, %p2752_p6 }
 0x5b5   : > { %p2327_p11 = pneg %p2326_p10 }
 0x5b7   : > { %2639 = dma.done.wait (%p2327_p11), %s2078_s9, 256  }
 0x5b8   : > { %2641 = vsyncadd (%p2327_p11), %s2078_s9, 4294967040  ;;  %p19_p12 = scmp.ge.s32.totalorder %s2735_s30, 6   ;;  %s4020_s24 = smov %s2648_s25 }
 0x5b9   : > { %s4021_s25 = smov %s2652_s26  ;;  %s4022_s26 = smov %s2746_s10 }
 0x5ba   : > { %s4023_s27 = smov %s2735_s30  ;;  %21 = sbr.rel (!%p19_p12) target bundleno = 5 (0x5), region = 98 }
 0x5bf   :  { %2084 = vsyncpa [#allocation3], 1 }
 0x5c0   :  { %2086 = vsyncpa [#allocation3 + $0x1], 1 }
 0x5c1   :  { %2087 = vsyncpa [#allocation6], 1 }
 0x5c2   :  { %2088 = vsyncpa [#allocation4], 1 }
 0x5c3   :  { %2090 = vsyncpa [#allocation4 + $0x1], 1 }

</bundles_post_ra>
